<compile_context>
chip_gen: v6e
topology: v6e:2x2x1
jax: 0.10.0
libtpu: 0.0.40
codegen_flags: <defaults>
</compile_context>

<pallas_src>
import jax
import jax.numpy as jnp
from jax import lax
from jax.experimental import pallas as pl
from jax.experimental.pallas import tpu as pltpu

# ----- small, module-consistent sizes (latent divisible by num_heads) -----
LATENT = 128            # stands in for 768
HEADS = 4               # stands in for 12
HEAD_DIM = LATENT // HEADS
SEQ = 8
BATCH = 2
EPS = 1e-5              # nn.LayerNorm default
COMPUTE_DTYPE = jnp.bfloat16   # MXU operand dtype; accumulation stays f32


def _layernorm(x, w, b):
    mean = jnp.mean(x, axis=-1, keepdims=True)
    var = jnp.mean((x - mean) ** 2, axis=-1, keepdims=True)   # biased, like PyTorch
    return (x - mean) * lax.rsqrt(var + EPS) * w + b


def encoder_block_kernel(x_ref, ln_w_ref, ln_b_ref,
                         qkv_w_ref, qkv_b_ref, out_w_ref, out_b_ref,
                         fc1_w_ref, fc1_b_ref, fc2_w_ref, fc2_b_ref,
                         o_ref):
    # One batch element per grid step: (L, E) tokens, lane axis = E = 128.
    x = x_ref[...].astype(jnp.float32)
    ln_w = ln_w_ref[0]                               # (E,)
    ln_b = ln_b_ref[0]

    # ---------- first LayerNorm ----------
    h = _layernorm(x, ln_w, ln_b)

    # ---------- packed QKV projection (pre-transposed weights, Q rows pre-scaled) ----
    qkv = (jnp.dot(h.astype(COMPUTE_DTYPE), qkv_w_ref[...],
                   preferred_element_type=jnp.float32) + qkv_b_ref[0])     # (L, 3E) f32

    # single reshape + one small transpose replaces the old per-head stack/concat
    qkvh = jnp.transpose(qkv.reshape(SEQ, 3 * HEADS, HEAD_DIM), (1, 0, 2))  # (3H, L, Dh)
    q = qkvh[:HEADS]                 # (H, L, Dh); already scaled by 1/sqrt(HEAD_DIM)
    k = qkvh[HEADS:2 * HEADS]
    v = qkvh[2 * HEADS:]

    # ---------- multi-head self-attention, head-batched dots (no cross-batch mask) ---
    s = jnp.einsum('hld,hsd->hls', q, k, preferred_element_type=jnp.float32)  # (H,L,L)
    s = s - jnp.max(s, axis=-1, keepdims=True)
    p = jnp.exp(s)
    p = p * pl.reciprocal(jnp.sum(p, axis=-1, keepdims=True), approx=True)
    ctx = jnp.einsum('hls,hsd->hld', p, v, preferred_element_type=jnp.float32)  # (H,L,Dh)

    # head merge folded into the output projection: out_w is (H, Dh, E)
    attn = jnp.einsum('hld,hde->hle', ctx.astype(COMPUTE_DTYPE), out_w_ref[...],
                      preferred_element_type=jnp.float32).sum(axis=0) + out_b_ref[0]

    first_added = attn + x

    # ---------- second LayerNorm (module reuses self.norm -> shared params) ----------
    h2 = _layernorm(first_added, ln_w, ln_b)

    # ---------- MLP: Linear(E,4E) -> GELU(tanh, EUP) -> Linear(4E,E) ----------
    ff = (jnp.dot(h2.astype(COMPUTE_DTYPE), fc1_w_ref[...],
                  preferred_element_type=jnp.float32) + fc1_b_ref[0])
    ff = jax.nn.gelu(ff, approximate=True)
    ff = (jnp.dot(ff.astype(COMPUTE_DTYPE), fc2_w_ref[...],
                  preferred_element_type=jnp.float32) + fc2_b_ref[0])

    o_ref[...] = (ff + first_added).astype(o_ref.dtype)


def encoder_block(x_lne, params):
    """x_lne: (L, N, E) float32 (nn.MultiheadAttention default layout). Returns (L, N, E)."""
    L, N, E = x_lne.shape
    assert (L, N, E) == (SEQ, BATCH, LATENT)

    # --- one-time layout prep OUTSIDE the kernel (no in-kernel weight transposes) ---
    scale = 1.0 / jnp.sqrt(jnp.float32(HEAD_DIM))
    row_scale = jnp.concatenate(
        [jnp.full((E,), scale, jnp.float32), jnp.ones((2 * E,), jnp.float32)])
    qkv_w = (params["in_w"] * row_scale[:, None]).T.astype(COMPUTE_DTYPE)   # (E, 3E)
    qkv_b = (params["in_b"] * row_scale)[None, :]                           # (1, 3E) f32
    out_w = params["out_w"].T.reshape(HEADS, HEAD_DIM, E).astype(COMPUTE_DTYPE)  # (H,Dh,E)
    out_b = params["out_b"][None, :]                                        # (1, E)
    fc1_w = params["fc1_w"].T.astype(COMPUTE_DTYPE)                         # (E, 4E)
    fc1_b = params["fc1_b"][None, :]                                        # (1, 4E)
    fc2_w = params["fc2_w"].T.astype(COMPUTE_DTYPE)                         # (4E, E)
    fc2_b = params["fc2_b"][None, :]                                        # (1, E)
    ln_w = params["ln_w"][None, :]                                          # (1, E)
    ln_b = params["ln_b"][None, :]                                          # (1, E)

    # batch-major token layout: (L, N, E) -> (N, L, E) -> (N*L, E).  Tiny XLA transpose
    # outside the kernel; lets each grid step own one batch element (no cross-batch mask).
    x_tokens = jnp.transpose(x_lne, (1, 0, 2)).reshape(N * L, E)

    operands = (x_tokens, ln_w, ln_b, qkv_w, qkv_b, out_w, out_b,
                fc1_w, fc1_b, fc2_w, fc2_b)

    def const_spec(shape):               # whole-array block, constant across the grid
        nd = len(shape)
        return pl.BlockSpec(shape, lambda n: (0,) * nd)

    in_specs = [pl.BlockSpec((L, E), lambda n: (n, 0))] + \
               [const_spec(op.shape) for op in operands[1:]]

    # advisory scheduler hint
    flops = int(2 * N * L * E * (3 * E + E + 4 * E + 4 * E)
                + 4 * N * HEADS * L * L * HEAD_DIM)
    transcendentals = int(N * HEADS * L * L + N * L * 4 * E + 4 * N * L)
    bytes_accessed = int(2 * N * L * E * 4
                         + sum(int(op.size) * op.dtype.itemsize for op in operands[1:]))

    out = pl.pallas_call(
        encoder_block_kernel,
        out_shape=jax.ShapeDtypeStruct((N * L, E), x_lne.dtype),
        grid_spec=pltpu.PrefetchScalarGridSpec(
            num_scalar_prefetch=0,
            grid=(N,),                     # batch axis: parallel -> both TCs on v7x
            in_specs=in_specs,
            out_specs=pl.BlockSpec((L, E), lambda n: (n, 0)),
        ),
        compiler_params=pltpu.CompilerParams(
            dimension_semantics=("parallel",)),
        cost_estimate=pl.CostEstimate(flops=flops,
                                      transcendentals=transcendentals,
                                      bytes_accessed=bytes_accessed),
    )(*operands)

    return jnp.transpose(out.reshape(N, L, E), (1, 0, 2))


def make_params(key):
    """Parameters in PyTorch layout (in_proj: (3E,E), linears: (out,in), 1-D biases)."""
    ks = jax.random.split(key, 8)
    s = 0.02
    return {
        "ln_w":  jnp.ones((LATENT,), jnp.float32),
        "ln_b":  jnp.zeros((LATENT,), jnp.float32),
        "in_w":  s * jax.random.normal(ks[0], (3 * LATENT, LATENT), jnp.float32),
        "in_b":  s * jax.random.normal(ks[1], (3 * LATENT,), jnp.float32),
        "out_w": s * jax.random.normal(ks[2], (LATENT, LATENT), jnp.float32),
        "out_b": s * jax.random.normal(ks[3], (LATENT,), jnp.float32),
        "fc1_w": s * jax.random.normal(ks[4], (4 * LATENT, LATENT), jnp.float32),
        "fc1_b": s * jax.random.normal(ks[5], (4 * LATENT,), jnp.float32),
        "fc2_w": s * jax.random.normal(ks[6], (LATENT, 4 * LATENT), jnp.float32),
        "fc2_b": s * jax.random.normal(ks[7], (LATENT,), jnp.float32),
    }


def reference(x_lne, p):
    """Pure-JAX f32 reference of the PyTorch forward (eval mode), PyTorch weight layout."""
    def ln(t):
        m = jnp.mean(t, axis=-1, keepdims=True)
        v = jnp.mean((t - m) ** 2, axis=-1, keepdims=True)
        return (t - m) / jnp.sqrt(v + EPS) * p["ln_w"] + p["ln_b"]

    L, N, E = x_lne.shape
    h = ln(x_lne)                                                 # (L, N, E)
    qkv = jnp.einsum("lne,fe->lnf", h, p["in_w"]) + p["in_b"]
    q, k, v = jnp.split(qkv, 3, axis=-1)

    def heads(t):                                                 # (L,N,E) -> (N,H,L,Dh)
        return jnp.transpose(t.reshape(L, N, HEADS, HEAD_DIM), (1, 2, 0, 3))

    qh, kh, vh = heads(q), heads(k), heads(v)
    s = jnp.einsum("nhqd,nhkd->nhqk", qh, kh) / jnp.sqrt(jnp.float32(HEAD_DIM))
    a = jax.nn.softmax(s, axis=-1)
    o = jnp.einsum("nhqk,nhkd->nhqd", a, vh)
    o = jnp.transpose(o, (2, 0, 1, 3)).reshape(L, N, E)
    attn = jnp.einsum("lne,fe->lnf", o, p["out_w"]) + p["out_b"]
    first = attn + x_lne
    h2 = ln(first)
    ff = jnp.einsum("lne,fe->lnf", h2, p["fc1_w"]) + p["fc1_b"]
    ff = jax.nn.gelu(ff, approximate=False)
    ff = jnp.einsum("lnf,ef->lne", ff, p["fc2_w"]) + p["fc2_b"]
    return ff + first


if __name__ == "__main__":
    key = jax.random.PRNGKey(0)
    kx, kp = jax.random.split(key)
    x = jax.random.normal(kx, (SEQ, BATCH, LATENT), jnp.float32)   # (L, N, E)
    params = make_params(kp)

    y = jax.block_until_ready(encoder_block(x, params))
    y_ref = reference(x, params)

    assert y.shape == (SEQ, BATCH, LATENT)
    # tolerance absorbs bf16 MXU operands, tanh GELU and the EUP approx reciprocal
    # vs the exact-f32/erf reference (observed error ~1e-3)
    assert jnp.allclose(y, y_ref, atol=1e-2, rtol=1e-2), "mismatch vs reference"
    print("KERNEL_OK")
</pallas_src>

<mosaic_0001>
module attributes {stable_mosaic.version = 11 : i64} {
  func.func @encoder_block_kernel(%arg0: i32, %arg1: memref<8x128xf32, #tpu.memory_space<vmem>>, %arg2: memref<1x128xf32, #tpu.memory_space<vmem>>, %arg3: memref<1x128xf32, #tpu.memory_space<vmem>>, %arg4: memref<128x384xbf16, #tpu.memory_space<vmem>>, %arg5: memref<1x384xf32, #tpu.memory_space<vmem>>, %arg6: memref<4x32x128xbf16, #tpu.memory_space<vmem>>, %arg7: memref<1x128xf32, #tpu.memory_space<vmem>>, %arg8: memref<128x512xbf16, #tpu.memory_space<vmem>>, %arg9: memref<1x512xf32, #tpu.memory_space<vmem>>, %arg10: memref<512x128xbf16, #tpu.memory_space<vmem>>, %arg11: memref<1x128xf32, #tpu.memory_space<vmem>>, %arg12: memref<8x128xf32, #tpu.memory_space<vmem>>) attributes {dimension_semantics = [#tpu.dimension_semantics<parallel>], iteration_bounds = array<i64: 2>, scalar_prefetch = 0 : i64, scratch_operands = 0 : i64, tpu.core_type = #tpu.core_type<tc>, window_params = [{transform_indices = @transform_0, window_bounds = array<i64: 8, 128>}, {pipeline_mode = #tpu.pipeline_mode<synchronous>, transform_indices = @transform_1, window_bounds = array<i64: 1, 128>}, {pipeline_mode = #tpu.pipeline_mode<synchronous>, transform_indices = @transform_2, window_bounds = array<i64: 1, 128>}, {pipeline_mode = #tpu.pipeline_mode<synchronous>, transform_indices = @transform_3, window_bounds = array<i64: 128, 384>}, {pipeline_mode = #tpu.pipeline_mode<synchronous>, transform_indices = @transform_4, window_bounds = array<i64: 1, 384>}, {pipeline_mode = #tpu.pipeline_mode<synchronous>, transform_indices = @transform_5, window_bounds = array<i64: 4, 32, 128>}, {pipeline_mode = #tpu.pipeline_mode<synchronous>, transform_indices = @transform_6, window_bounds = array<i64: 1, 128>}, {pipeline_mode = #tpu.pipeline_mode<synchronous>, transform_indices = @transform_7, window_bounds = array<i64: 128, 512>}, {pipeline_mode = #tpu.pipeline_mode<synchronous>, transform_indices = @transform_8, window_bounds = array<i64: 1, 512>}, {pipeline_mode = #tpu.pipeline_mode<synchronous>, transform_indices = @transform_9, window_bounds = array<i64: 512, 128>}, {pipeline_mode = #tpu.pipeline_mode<synchronous>, transform_indices = @transform_10, window_bounds = array<i64: 1, 128>}, {transform_indices = @transform_11, window_bounds = array<i64: 8, 128>}]} {
    %c0 = arith.constant 0 : index
    %c0_0 = arith.constant 0 : index
    %0 = vector.load %arg1[%c0, %c0_0] : memref<8x128xf32, #tpu.memory_space<vmem>>, vector<8x128xf32>
    %c0_1 = arith.constant 0 : index
    %c0_2 = arith.constant 0 : index
    %1 = vector.load %arg2[%c0_1, %c0_2] : memref<1x128xf32, #tpu.memory_space<vmem>>, vector<1x128xf32>
    %2 = vector.shape_cast %1 : vector<1x128xf32> to vector<128xf32>
    %c0_3 = arith.constant 0 : index
    %c0_4 = arith.constant 0 : index
    %3 = vector.load %arg3[%c0_3, %c0_4] : memref<1x128xf32, #tpu.memory_space<vmem>>, vector<1x128xf32>
    %4 = vector.shape_cast %3 : vector<1x128xf32> to vector<128xf32>
    %cst = arith.constant dense<0.000000e+00> : vector<8xf32>
    %5 = vector.multi_reduction <add>, %0, %cst [1] : vector<8x128xf32> to vector<8xf32>
    %6 = vector.shape_cast %5 : vector<8xf32> to vector<8x1xf32>
    %cst_5 = arith.constant 1.280000e+02 : f32
    %7 = vector.broadcast %cst_5 : f32 to vector<8x1xf32>
    %8 = arith.divf %6, %7 : vector<8x1xf32>
    %9 = vector.broadcast %8 : vector<8x1xf32> to vector<8x128xf32>
    %10 = arith.subf %0, %9 : vector<8x128xf32>
    %11 = arith.mulf %10, %10 : vector<8x128xf32>
    %cst_6 = arith.constant dense<0.000000e+00> : vector<8xf32>
    %12 = vector.multi_reduction <add>, %11, %cst_6 [1] : vector<8x128xf32> to vector<8xf32>
    %13 = vector.shape_cast %12 : vector<8xf32> to vector<8x1xf32>
    %cst_7 = arith.constant 1.280000e+02 : f32
    %14 = vector.broadcast %cst_7 : f32 to vector<8x1xf32>
    %15 = arith.divf %13, %14 : vector<8x1xf32>
    %16 = vector.broadcast %8 : vector<8x1xf32> to vector<8x128xf32>
    %17 = arith.subf %0, %16 : vector<8x128xf32>
    %cst_8 = arith.constant 9.99999974E-6 : f32
    %18 = vector.broadcast %cst_8 : f32 to vector<8x1xf32>
    %19 = arith.addf %15, %18 : vector<8x1xf32>
    %20 = math.rsqrt %19 : vector<8x1xf32>
    %21 = vector.broadcast %20 : vector<8x1xf32> to vector<8x128xf32>
    %22 = arith.mulf %17, %21 : vector<8x128xf32>
    %23 = vector.shape_cast %2 : vector<128xf32> to vector<1x128xf32>
    %24 = vector.broadcast %23 : vector<1x128xf32> to vector<8x128xf32>
    %25 = arith.mulf %22, %24 : vector<8x128xf32>
    %26 = vector.shape_cast %4 : vector<128xf32> to vector<1x128xf32>
    %27 = vector.broadcast %26 : vector<1x128xf32> to vector<8x128xf32>
    %28 = arith.addf %25, %27 : vector<8x128xf32>
    %29 = arith.truncf %28 : vector<8x128xf32> to vector<8x128xbf16>
    %c0_9 = arith.constant 0 : index
    %c0_10 = arith.constant 0 : index
    %30 = vector.load %arg4[%c0_9, %c0_10] : memref<128x384xbf16, #tpu.memory_space<vmem>>, vector<128x384xbf16>
    %cst_11 = arith.constant dense<0.000000e+00> : vector<8x384xf32>
    %31 = tpu.matmul %29, %30, %cst_11 {dimension_numbers = #tpu.dot_dimension_numbers<[1], [0], [0], [1], [0, 0, 1, 1], [], []>} : vector<8x128xbf16>, vector<128x384xbf16>, vector<8x384xf32> -> vector<8x384xf32>
    %c0_12 = arith.constant 0 : index
    %c0_13 = arith.constant 0 : index
    %32 = vector.load %arg5[%c0_12, %c0_13] : memref<1x384xf32, #tpu.memory_space<vmem>>, vector<1x384xf32>
    %33 = vector.shape_cast %32 : vector<1x384xf32> to vector<384xf32>
    %34 = vector.shape_cast %33 : vector<384xf32> to vector<1x384xf32>
    %35 = vector.broadcast %34 : vector<1x384xf32> to vector<8x384xf32>
    %36 = arith.addf %31, %35 : vector<8x384xf32>
    %37 = vector.shape_cast %36 : vector<8x384xf32> to vector<8x12x32xf32>
    %38 = tpu.transpose %37, [1, 0, 2] : vector<8x12x32xf32> -> vector<12x8x32xf32>
    %39 = vector.extract_strided_slice %38 {offsets = [0, 0, 0], sizes = [4, 8, 32], strides = [1, 1, 1]} : vector<12x8x32xf32> to vector<4x8x32xf32>
    %40 = vector.extract_strided_slice %38 {offsets = [4, 0, 0], sizes = [4, 8, 32], strides = [1, 1, 1]} : vector<12x8x32xf32> to vector<4x8x32xf32>
    %41 = vector.extract_strided_slice %38 {offsets = [8, 0, 0], sizes = [4, 8, 32], strides = [1, 1, 1]} : vector<12x8x32xf32> to vector<4x8x32xf32>
    "tpu.trace_start"() <{level = 10 : i32, message = "hld,hsd->hls"}> : () -> ()
    %cst_14 = arith.constant dense<0.000000e+00> : vector<4x8x8xf32>
    %42 = tpu.matmul %39, %40, %cst_14 {dimension_numbers = #tpu.dot_dimension_numbers<[2], [2], [1], [1], [0, 0, 0, 1, 1, 1], [0], [0]>} : vector<4x8x32xf32>, vector<4x8x32xf32>, vector<4x8x8xf32> -> vector<4x8x8xf32>
    "tpu.trace_stop"() : () -> ()
    %cst_15 = arith.constant dense<0xFF800000> : vector<4x8xf32>
    %43 = vector.multi_reduction <maximumf>, %42, %cst_15 [2] : vector<4x8x8xf32> to vector<4x8xf32>
    %44 = vector.shape_cast %43 : vector<4x8xf32> to vector<4x8x1xf32>
    %45 = vector.broadcast %44 : vector<4x8x1xf32> to vector<4x8x8xf32>
    %46 = arith.subf %42, %45 : vector<4x8x8xf32>
    %47 = math.exp %46 : vector<4x8x8xf32>
    %cst_16 = arith.constant dense<0.000000e+00> : vector<4x8xf32>
    %48 = vector.multi_reduction <add>, %47, %cst_16 [2] : vector<4x8x8xf32> to vector<4x8xf32>
    %49 = vector.shape_cast %48 : vector<4x8xf32> to vector<4x8x1xf32>
    %50 = tpu.reciprocal %49 {approx = true} : vector<4x8x1xf32> -> vector<4x8x1xf32>
    %51 = vector.broadcast %50 : vector<4x8x1xf32> to vector<4x8x8xf32>
    %52 = arith.mulf %47, %51 : vector<4x8x8xf32>
    "tpu.trace_start"() <{level = 10 : i32, message = "hls,hsd->hld"}> : () -> ()
    %cst_17 = arith.constant dense<0.000000e+00> : vector<4x8x32xf32>
    %53 = tpu.matmul %52, %41, %cst_17 {dimension_numbers = #tpu.dot_dimension_numbers<[2], [1], [1], [2], [0, 0, 0, 1, 1, 2], [0], [0]>} : vector<4x8x8xf32>, vector<4x8x32xf32>, vector<4x8x32xf32> -> vector<4x8x32xf32>
    "tpu.trace_stop"() : () -> ()
    %54 = arith.truncf %53 : vector<4x8x32xf32> to vector<4x8x32xbf16>
    %c0_18 = arith.constant 0 : index
    %c0_19 = arith.constant 0 : index
    %c0_20 = arith.constant 0 : index
    %55 = vector.load %arg6[%c0_18, %c0_19, %c0_20] : memref<4x32x128xbf16, #tpu.memory_space<vmem>>, vector<4x32x128xbf16>
    "tpu.trace_start"() <{level = 10 : i32, message = "hld,hde->hle"}> : () -> ()
    %cst_21 = arith.constant dense<0.000000e+00> : vector<4x8x128xf32>
    %56 = tpu.matmul %54, %55, %cst_21 {dimension_numbers = #tpu.dot_dimension_numbers<[2], [1], [1], [2], [0, 0, 0, 1, 1, 2], [0], [0]>} : vector<4x8x32xbf16>, vector<4x32x128xbf16>, vector<4x8x128xf32> -> vector<4x8x128xf32>
    "tpu.trace_stop"() : () -> ()
    %cst_22 = arith.constant dense<0.000000e+00> : vector<8x128xf32>
    %57 = vector.multi_reduction <add>, %56, %cst_22 [0] : vector<4x8x128xf32> to vector<8x128xf32>
    %c0_23 = arith.constant 0 : index
    %c0_24 = arith.constant 0 : index
    %58 = vector.load %arg7[%c0_23, %c0_24] : memref<1x128xf32, #tpu.memory_space<vmem>>, vector<1x128xf32>
    %59 = vector.shape_cast %58 : vector<1x128xf32> to vector<128xf32>
    %60 = vector.shape_cast %59 : vector<128xf32> to vector<1x128xf32>
    %61 = vector.broadcast %60 : vector<1x128xf32> to vector<8x128xf32>
    %62 = arith.addf %57, %61 : vector<8x128xf32>
    %63 = arith.addf %62, %0 : vector<8x128xf32>
    %cst_25 = arith.constant dense<0.000000e+00> : vector<8xf32>
    %64 = vector.multi_reduction <add>, %63, %cst_25 [1] : vector<8x128xf32> to vector<8xf32>
    %65 = vector.shape_cast %64 : vector<8xf32> to vector<8x1xf32>
    %cst_26 = arith.constant 1.280000e+02 : f32
    %66 = vector.broadcast %cst_26 : f32 to vector<8x1xf32>
    %67 = arith.divf %65, %66 : vector<8x1xf32>
    %68 = vector.broadcast %67 : vector<8x1xf32> to vector<8x128xf32>
    %69 = arith.subf %63, %68 : vector<8x128xf32>
    %70 = arith.mulf %69, %69 : vector<8x128xf32>
    %cst_27 = arith.constant dense<0.000000e+00> : vector<8xf32>
    %71 = vector.multi_reduction <add>, %70, %cst_27 [1] : vector<8x128xf32> to vector<8xf32>
    %72 = vector.shape_cast %71 : vector<8xf32> to vector<8x1xf32>
    %cst_28 = arith.constant 1.280000e+02 : f32
    %73 = vector.broadcast %cst_28 : f32 to vector<8x1xf32>
    %74 = arith.divf %72, %73 : vector<8x1xf32>
    %75 = vector.broadcast %67 : vector<8x1xf32> to vector<8x128xf32>
    %76 = arith.subf %63, %75 : vector<8x128xf32>
    %cst_29 = arith.constant 9.99999974E-6 : f32
    %77 = vector.broadcast %cst_29 : f32 to vector<8x1xf32>
    %78 = arith.addf %74, %77 : vector<8x1xf32>
    %79 = math.rsqrt %78 : vector<8x1xf32>
    %80 = vector.broadcast %79 : vector<8x1xf32> to vector<8x128xf32>
    %81 = arith.mulf %76, %80 : vector<8x128xf32>
    %82 = vector.shape_cast %2 : vector<128xf32> to vector<1x128xf32>
    %83 = vector.broadcast %82 : vector<1x128xf32> to vector<8x128xf32>
    %84 = arith.mulf %81, %83 : vector<8x128xf32>
    %85 = vector.shape_cast %4 : vector<128xf32> to vector<1x128xf32>
    %86 = vector.broadcast %85 : vector<1x128xf32> to vector<8x128xf32>
    %87 = arith.addf %84, %86 : vector<8x128xf32>
    %88 = arith.truncf %87 : vector<8x128xf32> to vector<8x128xbf16>
    %c0_30 = arith.constant 0 : index
    %c0_31 = arith.constant 0 : index
    %89 = vector.load %arg8[%c0_30, %c0_31] : memref<128x512xbf16, #tpu.memory_space<vmem>>, vector<128x512xbf16>
    %cst_32 = arith.constant dense<0.000000e+00> : vector<8x512xf32>
    %90 = tpu.matmul %88, %89, %cst_32 {dimension_numbers = #tpu.dot_dimension_numbers<[1], [0], [0], [1], [0, 0, 1, 1], [], []>} : vector<8x128xbf16>, vector<128x512xbf16>, vector<8x512xf32> -> vector<8x512xf32>
    %c0_33 = arith.constant 0 : index
    %c0_34 = arith.constant 0 : index
    %91 = vector.load %arg9[%c0_33, %c0_34] : memref<1x512xf32, #tpu.memory_space<vmem>>, vector<1x512xf32>
    %92 = vector.shape_cast %91 : vector<1x512xf32> to vector<512xf32>
    %93 = vector.shape_cast %92 : vector<512xf32> to vector<1x512xf32>
    %94 = vector.broadcast %93 : vector<1x512xf32> to vector<8x512xf32>
    %95 = arith.addf %90, %94 : vector<8x512xf32>
    %96 = arith.mulf %95, %95 : vector<8x512xf32>
    %97 = arith.mulf %95, %96 : vector<8x512xf32>
    %cst_35 = arith.constant 4.471500e-02 : f32
    %98 = vector.broadcast %cst_35 : f32 to vector<8x512xf32>
    %99 = arith.mulf %98, %97 : vector<8x512xf32>
    %100 = arith.addf %95, %99 : vector<8x512xf32>
    %cst_36 = arith.constant 0.797884583 : f32
    %101 = vector.broadcast %cst_36 : f32 to vector<8x512xf32>
    %102 = arith.mulf %101, %100 : vector<8x512xf32>
    %103 = math.tanh %102 : vector<8x512xf32>
    %cst_37 = arith.constant 1.000000e+00 : f32
    %104 = vector.broadcast %cst_37 : f32 to vector<8x512xf32>
    %105 = arith.addf %104, %103 : vector<8x512xf32>
    %cst_38 = arith.constant 5.000000e-01 : f32
    %106 = vector.broadcast %cst_38 : f32 to vector<8x512xf32>
    %107 = arith.mulf %106, %105 : vector<8x512xf32>
    %108 = arith.mulf %95, %107 : vector<8x512xf32>
    %109 = arith.truncf %108 : vector<8x512xf32> to vector<8x512xbf16>
    %c0_39 = arith.constant 0 : index
    %c0_40 = arith.constant 0 : index
    %110 = vector.load %arg10[%c0_39, %c0_40] : memref<512x128xbf16, #tpu.memory_space<vmem>>, vector<512x128xbf16>
    %cst_41 = arith.constant dense<0.000000e+00> : vector<8x128xf32>
    %111 = tpu.matmul %109, %110, %cst_41 {dimension_numbers = #tpu.dot_dimension_numbers<[1], [0], [0], [1], [0, 0, 1, 1], [], []>} : vector<8x512xbf16>, vector<512x128xbf16>, vector<8x128xf32> -> vector<8x128xf32>
    %c0_42 = arith.constant 0 : index
    %c0_43 = arith.constant 0 : index
    %112 = vector.load %arg11[%c0_42, %c0_43] : memref<1x128xf32, #tpu.memory_space<vmem>>, vector<1x128xf32>
    %113 = vector.shape_cast %112 : vector<1x128xf32> to vector<128xf32>
    %114 = vector.shape_cast %113 : vector<128xf32> to vector<1x128xf32>
    %115 = vector.broadcast %114 : vector<1x128xf32> to vector<8x128xf32>
    %116 = arith.addf %111, %115 : vector<8x128xf32>
    %117 = arith.addf %116, %63 : vector<8x128xf32>
    %c0_44 = arith.constant 0 : index
    %c0_45 = arith.constant 0 : index
    %118 = vector.load %arg12[%c0_44, %c0_45] : memref<8x128xf32, #tpu.memory_space<vmem>>, vector<8x128xf32>
    tpu.vector_store %arg12[%c0_44, %c0_45], %117 {strides = array<i32>} : memref<8x128xf32, #tpu.memory_space<vmem>>, vector<8x128xf32>,
    return
  }
  func.func @transform_0(%arg0: i32) -> (i32, i32) {
    %c0_i32 = arith.constant 0 : i32
    %c0_i32_0 = arith.constant 0 : i32
    return %arg0, %c0_i32 : i32, i32
  }
  func.func @transform_1(%arg0: i32) -> (i32, i32) {
    %c0_i32 = arith.constant 0 : i32
    %c0_i32_0 = arith.constant 0 : i32
    %c0_i32_1 = arith.constant 0 : i32
    return %c0_i32, %c0_i32_0 : i32, i32
  }
  func.func @transform_2(%arg0: i32) -> (i32, i32) {
    %c0_i32 = arith.constant 0 : i32
    %c0_i32_0 = arith.constant 0 : i32
    %c0_i32_1 = arith.constant 0 : i32
    return %c0_i32, %c0_i32_0 : i32, i32
  }
  func.func @transform_3(%arg0: i32) -> (i32, i32) {
    %c0_i32 = arith.constant 0 : i32
    %c0_i32_0 = arith.constant 0 : i32
    %c0_i32_1 = arith.constant 0 : i32
    return %c0_i32, %c0_i32_0 : i32, i32
  }
  func.func @transform_4(%arg0: i32) -> (i32, i32) {
    %c0_i32 = arith.constant 0 : i32
    %c0_i32_0 = arith.constant 0 : i32
    %c0_i32_1 = arith.constant 0 : i32
    return %c0_i32, %c0_i32_0 : i32, i32
  }
  func.func @transform_5(%arg0: i32) -> (i32, i32, i32) {
    %c0_i32 = arith.constant 0 : i32
    %c0_i32_0 = arith.constant 0 : i32
    %c0_i32_1 = arith.constant 0 : i32
    %c0_i32_2 = arith.constant 0 : i32
    return %c0_i32, %c0_i32_0, %c0_i32_1 : i32, i32, i32
  }
  func.func @transform_6(%arg0: i32) -> (i32, i32) {
    %c0_i32 = arith.constant 0 : i32
    %c0_i32_0 = arith.constant 0 : i32
    %c0_i32_1 = arith.constant 0 : i32
    return %c0_i32, %c0_i32_0 : i32, i32
  }
  func.func @transform_7(%arg0: i32) -> (i32, i32) {
    %c0_i32 = arith.constant 0 : i32
    %c0_i32_0 = arith.constant 0 : i32
    %c0_i32_1 = arith.constant 0 : i32
    return %c0_i32, %c0_i32_0 : i32, i32
  }
  func.func @transform_8(%arg0: i32) -> (i32, i32) {
    %c0_i32 = arith.constant 0 : i32
    %c0_i32_0 = arith.constant 0 : i32
    %c0_i32_1 = arith.constant 0 : i32
    return %c0_i32, %c0_i32_0 : i32, i32
  }
  func.func @transform_9(%arg0: i32) -> (i32, i32) {
    %c0_i32 = arith.constant 0 : i32
    %c0_i32_0 = arith.constant 0 : i32
    %c0_i32_1 = arith.constant 0 : i32
    return %c0_i32, %c0_i32_0 : i32, i32
  }
  func.func @transform_10(%arg0: i32) -> (i32, i32) {
    %c0_i32 = arith.constant 0 : i32
    %c0_i32_0 = arith.constant 0 : i32
    %c0_i32_1 = arith.constant 0 : i32
    return %c0_i32, %c0_i32_0 : i32, i32
  }
  func.func @transform_11(%arg0: i32) -> (i32, i32) {
    %c0_i32 = arith.constant 0 : i32
    %c0_i32_0 = arith.constant 0 : i32
    return %arg0, %c0_i32 : i32, i32
  }
}

</mosaic_0001>

<bundles_post_ra>
// kernel: tpu_custom_call.1
= control target key start
LH: loop header
LB: loop body
LE: loop exit
PB: predicated region body
PF: predicated region fallthrough
CT: control target
= control target key end

     0   :  { %s4311_s0 = inlined_call_operand.hbm [shape: f32[16,128], index: 0, kind: input, shape index: {}]   ;;  %s4312_s1 = inlined_call_operand.hbm [shape: f32[1,128], index: 1, kind: input, shape index: {}]   ;;  %s4313_s2 = inlined_call_operand.hbm [shape: f32[1,128], index: 2, kind: input, shape index: {}]   ;;  %s4314_s3 = inlined_call_operand.hbm [shape: bf16[128,384], index: 3, kind: input, shape index: {}]   ;;  %s4315_s4 = inlined_call_operand.vmem [shape: f32[1,384], index: 4, kind: input, shape index: {}]   ;;  %s4316_s5 = inlined_call_operand.hbm [shape: bf16[4,32,128], index: 5, kind: input, shape index: {}]   ;;  %s4317_s6 = inlined_call_operand.vmem [shape: f32[1,128], index: 6, kind: input, shape index: {}]   ;;  %s4318_s7 = inlined_call_operand.hbm [shape: bf16[128,512], index: 7, kind: input, shape index: {}]   ;;  %s4319_s8 = inlined_call_operand.vmem [shape: f32[1,512], index: 8, kind: input, shape index: {}]   ;;  %s4320_s9 = inlined_call_operand.hbm [shape: bf16[512,128], index: 9, kind: input, shape index: {}]   ;;  %s4321_s10 = inlined_call_operand.vmem [shape: f32[1,128], index: 10, kind: input, shape index: {}]   ;;  %s4322_s11 = inlined_call_operand.hbm [shape: f32[16,128], index: 11, kind: output, shape index: {}]  }
   0x1   :  { %4327 = sst [smem:[#allocation20_spill]] %s4312_s1 }
   0x2   :  { %4328 = sst [smem:[#allocation21_spill]] %s4313_s2 }
   0x3   :  { %4329 = sst [smem:[#allocation22_spill]] %s4314_s3 }
   0x4   :  { %4330 = sst [smem:[#allocation23_spill]] %s4316_s5 }
   0x5   :  { %4331 = sst [smem:[#allocation24_spill]] %s4318_s7 }
   0x6   :  { %4332 = sst [smem:[#allocation25_spill]] %s4320_s9 }
   0x7   :  { %16 = vsyncpa [#allocation3], 0 }
   0x8   :  { %18 = vsyncpa [#allocation3 + $0x1], 0 }
   0x9   :  { %19 = vsyncpa [#allocation6], 0 }
   0xa   :  { %20 = vsyncpa [#allocation9], 0 }
   0xb   :  { %21 = vsyncpa [#allocation12], 0 }
   0xc   :  { %22 = vsyncpa [#allocation4], 0 }
   0xd   :  { %24 = vsyncpa [#allocation4 + $0x1], 0  ;;  %s3879_s17 = smov 0   ;;  %s3881_s18 = smov 0  }
   0xe   :  { %s3883_s19 = smov 0   ;;  %s3885_s20 = smov 0  }
   0xf LB: > { %s3797_s21 = smov [#allocation5]   ;;  %s3900_s23 = sadd.s32 4294967295, %s3795_s20   ;;  %s3795_s20 = sphi %s3885_s20, %s4362_s20   ;;  %s3791_s19 = sphi %s3883_s19, %s4361_s19   ;;  %s3787_s18 = sphi %s3881_s18, %s4360_s18   ;;  %s3783_s17 = sphi %s3879_s17, %s4359_s17  }
  0x10   : > { %s310_s22 = sshll.u32 %s3797_s21, 4  ;;  %p2943_p0 = scmp.ge.s32.totalorder %s3795_s20, 1  ;;  %s311_s22 = int_to_ptr.vmem [resolvable:$true] %s310_s22 }
  0x11   : > { %p4323_p1 = scmp.eq.s32.totalorder %s3900_s23, 0  ;;  %p297_p2 = scmp.lt.s32.totalorder %s3795_s20, 3 }
  0x12   : > { %s3798_s25 = smov [#allocation8]   ;;  %s3799_s28 = smov [#allocation11]  }
  0x13   : > { %p3905_p3 = pnand %p2943_p0, %p297_p2  ;;  %s331_s26 = sshll.u32 %s3798_s25, 4  ;;  %s3912_s26 = int_to_ptr.vmem [resolvable:$true] %s331_s26 }
  0x14   : > { %s363_s29 = sshll.u32 %s3799_s28, 4  ;;  %s3546_s12 = scalar_lea.vmem %s311_s22, 16  ;;  %s3920_s29 = int_to_ptr.vmem [resolvable:$true] %s363_s29 }
  0x15   : > { %s4333_s24 = scalar_select %p3905_p3, 1, 0 }
  0x16   : > { %p3293_p5 = pneg %p3905_p3  ;;  %p3547_p8 = scmp.ne.s32.totalorder %s311_s22, %s3546_s12 }
  0x17   : > { %s3553_s13 = scalar_lea.vmem %s311_s22, 32  ;;  %p3554_p11 = scmp.lt.s32.totalorder %s311_s22, %s311_s22 }
  0x18   : > { %p3916_p6 = pnand %p3293_p5, %p4323_p1  ;;  %p3555_p12 = scmp.lt.s32.totalorder %s3553_s13, %s3546_s12 }
  0x1a   : > { %p3924_p7 = pneg %p3916_p6  ;;  %p3556_p13 = por %p3555_p12, %p3554_p11 }
  0x1c   : > { %p3549_p9 = pnand %p3547_p8, %p3924_p7 }
  0x1e   : > { %p3550_p10 = pneg %p3549_p9 }
  0x20   : > { %p3557_p0 = pnand %p3556_p13, %p3550_p10 }
  0x22   : > { %3560 = shalt.err (!%p3557_p0)
}
  0x23   : > { %s4336_s1 = sld [smem:[#allocation20_spill]]  ;;  %s3572_s16 = scalar_lea.vmem %s3912_s26, 3072 }
  0x24   : > { %p3573_p2 = scmp.ne.s32.totalorder %s3912_s26, %s3572_s16  ;;  %p3580_p9 = scmp.lt.s32.totalorder %s3912_s26, %s3912_s26 }
  0x25   : > { %p3581_p11 = scmp.lt.s32.totalorder %s3572_s16, %s3572_s16 }
  0x26   : > { %p3575_p5 = pnand %p3573_p2, %p3924_p7 }
  0x27   : > { %p3582_p10 = por %p3581_p11, %p3580_p9 }
  0x28   : > { %p3576_p8 = pneg %p3575_p5 }
  0x29   : > { %3296 = dma.hbm_to_vmem [thread:$0]  (!%p3916_p6), %s4336_s1, 16, %s311_s22, [#allocation6]  }
  0x2a   : > { %p3583_p12 = pnand %p3582_p10, %p3576_p8 }
  0x2c   : > { %3586 = shalt.err (!%p3583_p12)
}
  0x2d   : > { %s3800_s21 = smov 192   ;;  %s3801_s25 = smov 12  }
  0x2e   : > { %s4337_s3 = sld [smem:[#allocation22_spill]]  ;;  %s3598_s12 = scalar_lea.vmem %s3920_s29, 4096 }
  0x2f   : > { %p3599_p13 = scmp.ne.s32.totalorder %s3920_s29, %s3598_s12  ;;  %p3606_p5 = scmp.lt.s32.totalorder %s3920_s29, %s3920_s29 }
  0x30   : > { %p3607_p8 = scmp.lt.s32.totalorder %s3598_s12, %s3598_s12 }
  0x31   : > { %p3601_p0 = pnand %p3599_p13, %p3924_p7 }
  0x32   : > { %p3608_p9 = por %p3607_p8, %p3606_p5 }
  0x33   : > { %p3602_p2 = pneg %p3601_p0 }
  0x34   : > { %3302 = dma.hbm_to_vmem [thread:$0]  (!%p3916_p6), %s4337_s3, 3072, %s3912_s26, [#allocation9], %s3800_s21, %s3800_s21, %s3801_s25  }
  0x35   : > { %p3609_p11 = pnand %p3608_p9, %p3602_p2 }
  0x37   : > { %3612 = shalt.err (!%p3609_p11)
}
  0x38   : > { %s3802_s13 = smov 256   ;;  %s3803_s14 = smov 16  }
  0x39   : > { %s4338_s7 = sld [smem:[#allocation24_spill]]  ;;  %s3804_s26 = smov [#allocation7]  }
  0x3a   : > { %s321_s21 = sshll.u32 %s3804_s26, 4  ;;  %s3805_s25 = smov [#allocation10]   ;;  %s322_s21 = int_to_ptr.vmem [resolvable:$true] %s321_s21 }
  0x3b   : > { %s347_s22 = sshll.u32 %s3805_s25, 4  ;;  %s3624_s28 = scalar_lea.vmem %s322_s21, 16  ;;  %s348_s22 = int_to_ptr.vmem [resolvable:$true] %s347_s22 }
  0x3c   : > { %p3625_p10 = scmp.ne.s32.totalorder %s322_s21, %s3624_s28  ;;  %s3631_s12 = scalar_lea.vmem %s322_s21, 32 }
  0x3d   : > { %p3632_p0 = scmp.lt.s32.totalorder %s322_s21, %s322_s21  ;;  %p3633_p2 = scmp.lt.s32.totalorder %s3631_s12, %s3624_s28 }
  0x3e   : > { %p3627_p12 = pnand %p3625_p10, %p3924_p7 }
  0x3f   : > { %3308 = dma.hbm_to_vmem [thread:$0]  (!%p3916_p6), %s4338_s7, 4096, %s3920_s29, [#allocation12], %s3802_s13, %s3802_s13, %s3803_s14  }
  0x40   : > { %p3628_p13 = pneg %p3627_p12  ;;  %p3634_p5 = por %p3633_p2, %p3632_p0 }
  0x42   : > { %p3635_p8 = pnand %p3634_p5, %p3628_p13 }
  0x44   : > { %3638 = shalt.err (!%p3635_p8)
}
  0x45   : > { %s4339_s2 = sld [smem:[#allocation21_spill]]  ;;  %s3650_s13 = scalar_lea.vmem %s348_s22, 1024 }
  0x46   : > { %p3651_p9 = scmp.ne.s32.totalorder %s348_s22, %s3650_s13  ;;  %p3658_p12 = scmp.lt.s32.totalorder %s348_s22, %s348_s22 }
  0x47   : > { %p3659_p4 = scmp.lt.s32.totalorder %s3650_s13, %s3650_s13 }
  0x48   : > { %p3653_p11 = pnand %p3651_p9, %p3924_p7 }
  0x49   : > { %p3660_p1 = por %p3659_p4, %p3658_p12 }
  0x4a   : > { %p3654_p10 = pneg %p3653_p11 }
  0x4b   : > { %3299 = dma.hbm_to_vmem [thread:$0]  (!%p3916_p6), %s4339_s2, 16, %s322_s21, [#allocation6]  }
  0x4c   : > { %p3661_p3 = pnand %p3660_p1, %p3654_p10 }
  0x4e   : > { %3664 = shalt.err (!%p3661_p3)
}
  0x4f   : > { %s3806_s14 = smov 64   ;;  %s3807_s16 = smov 4  }
  0x50   : > { %s4340_s5 = sld [smem:[#allocation23_spill]]  ;;  %s3808_s21 = smov [#allocation13]  }
  0x51   : > { %s379_s28 = sshll.u32 %s3808_s21, 4  ;;  %s380_s28 = int_to_ptr.vmem [resolvable:$true] %s379_s28 }
  0x52   : > { %s3676_s12 = scalar_lea.vmem %s380_s28, 4096  ;;  %p3684_p4 = scmp.lt.s32.totalorder %s380_s28, %s380_s28 }
  0x53   : > { %p3677_p13 = scmp.ne.s32.totalorder %s380_s28, %s3676_s12  ;;  %p3685_p1 = scmp.lt.s32.totalorder %s3676_s12, %s3676_s12 }
  0x55   : > { %p3679_p0 = pnand %p3677_p13, %p3924_p7  ;;  %p3686_p3 = por %p3685_p1, %p3684_p4 }
  0x56   : > { %3305 = dma.hbm_to_vmem [thread:$0]  (!%p3916_p6), %s4340_s5, 1024, %s348_s22, [#allocation9], %s3806_s14, %s3806_s14, %s3807_s16  }
  0x57   : > { %p3680_p2 = pneg %p3679_p0 }
  0x59   : > { %p3687_p5 = pnand %p3686_p3, %p3680_p2 }
  0x5b   : > { %3690 = shalt.err (!%p3687_p5)
}
  0x5c   : > { %s4341_s9 = sld [smem:[#allocation25_spill]]  ;;  %s2942_s30 = sadd.s32 4294967294, %s3795_s20  }
  0x5d   : > { %s3982_s27 = sadd.s32 1, %s3795_s20   ;;  %s37_s13 = sadd.s32 1, %s3791_s19 }
  0x5e   : > { %s34_s22 = ssub.s32 %s3795_s20, %s3982_s27  ;;  %p44_p8 = scmp.ne.s32.totalorder %s3791_s19, %s3787_s18 }
  0x5f   : > { %p35_p7 = scmp.eq.s32.totalorder %s34_s22, 0  ;;  %p45_p9 = scmp.eq.s32.totalorder %s3795_s20, 0 }
  0x60   : > { %p50_p11 = scmp.ne.s32.totalorder %s3787_s18, %s3783_s17  ;;  %p4343_p12 = scmp.eq.s32.totalorder %s3900_s23, 0 }
  0x61   : > { %s3993_s26 = scalar_select %p35_p7, %s3791_s19, %s37_s13  }
  0x62   : > { %3311 = dma.hbm_to_vmem [thread:$0]  (!%p3916_p6), %s4341_s9, 4096, %s380_s28, [#allocation12], %s3806_s14, %s3806_s14, %s3807_s16  }
  0x63   : > { %p3995_p10 = por %p45_p9, %p44_p8  ;;  %p4001_p6 = por %p4343_p12, %p50_p11 }
  0x64   : > { %p284_p13 = scmp.eq.s32.totalorder %s3900_s23, 1  ;;  %p290_p0 = scmp.eq.s32.totalorder %s2942_s30, 1 }
  0x65   : > { %s4344_s14 = scalar_select %p4001_p6, 1, 0 }
  0x66   : > { %p3326_p2 = scmp.lt.s32.totalorder %s3795_s20, 2  ;;  %s396_s16 = sand.u32 1, %s3791_s19  }
  0x67   : > { %p4008_p4 = por %p284_p13, %p44_p8  ;;  %p4012_p1 = por %p290_p0, %p50_p11 }
  0x68   : > { %s2951_s12 = sshll.u32 %s396_s16, 3  ;;  %s2952_s15 = sshll.u32 %s3795_s20, 7 }
  0x69   : > { %s4345_s21 = scalar_select %p4008_p4, 1, 0 }
  0x6a   : > { %s4346_s28 = scalar_select %p4012_p1, 1, 0 }
  0x6b   : > { %s4020_s13 = scalar_lea.hbm %s4311_s0, %s2952_s15  ;;  %s400_s30 = scalar_lea.vmem [#allocation2], %s2951_s12 }
  0x6c   : > { %s407_s1 = sshll.u32 %s400_s30, 4  ;;  %p4024_p3 = pnand %p3326_p2, %p3995_p10  ;;  %s408_s1 = int_to_ptr.vmem [resolvable:$true] %s407_s1 }
  0x6d   : > { %s397_s3 = scalar_lea.sflag [#allocation3], %s396_s16  ;;  %s3691_s5 = scalar_lea.hbm %s4020_s13, 128 }
  0x6e   : > { %p3692_p5 = scmp.ne.s32.totalorder %s4020_s13, %s3691_s5  ;;  %p3693_p7 = pneg %p4024_p3 }
  0x6f   : > { %s3696_s22 = scalar_lea.hbm %s4311_s0, 256  ;;  %p3697_p11 = scmp.lt.s32.totalorder %s4020_s13, %s4311_s0 }
  0x70   : > { %p3694_p8 = pnand %p3693_p7, %p3692_p5  ;;  %p3698_p10 = scmp.lt.s32.totalorder %s3696_s22, %s3691_s5 }
  0x72   : > { %p3695_p9 = pneg %p3694_p8  ;;  %p3699_p12 = por %p3698_p10, %p3697_p11 }
  0x74   : > { %p3700_p13 = pnand %p3699_p12, %p3695_p9 }
  0x76   : > { %3703 = shalt.err (!%p3700_p13)
}
  0x77   : > { %s3704_s25 = scalar_lea.vmem %s408_s1, 128  ;;  %s3809_s16 = smov [#allocation2]  }
  0x78   : > { %p3705_p0 = scmp.ne.s32.totalorder %s408_s1, %s3704_s25  ;;  %s3709_s7 = sshll.u32 %s3809_s16, 4  ;;  %s3710_s7 = int_to_ptr.vmem [resolvable:$false] %s3709_s7 }
  0x79   : > { %s3711_s9 = scalar_lea.vmem %s3710_s7, 256  ;;  %p3712_p5 = scmp.lt.s32.totalorder %s408_s1, %s3710_s7 }
  0x7a   : > { %p3707_p2 = pnand %p3705_p0, %p3693_p7  ;;  %p3713_p8 = scmp.lt.s32.totalorder %s3711_s9, %s3704_s25 }
  0x7c   : > { %p3708_p1 = pneg %p3707_p2  ;;  %p3714_p4 = por %p3713_p8, %p3712_p5 }
  0x7e   : > { %p3715_p6 = pnand %p3714_p4, %p3708_p1 }
  0x80   : > { %3718 = shalt.err (!%p3715_p6)
}
  0x81   : > { %3315 = dma.hbm_to_vmem [thread:$0]  (!%p4024_p3), %s4020_s13, 128, %s408_s1, %s397_s3  }
  0x82   : > { %p4348_p9 = scmp.ne.s32.totalorder %s4333_s24, 0 }
  0x83   : > { %s4045_s5 = sand.u32 (!%p4348_p9), 1, %s3787_s18   ;;  %p4349_p6 = scmp.ne.s32.totalorder (!%p4348_p9), %s4344_s14, 0 }
  0x84   : > { %416 = sbr.rel (%p4348_p9) target bundleno = 2510 (0x9ce), region = 64  ;;  %s2954_s15 = sshll.u32 (!%p4348_p9), %s4045_s5, 3 }
  0x85   : > { %s419_s7 = scalar_lea.sflag (!%p4348_p9), [#allocation3], %s4045_s5  ;;  %s4051_s9 = scalar_lea.vmem (!%p4348_p9), [#allocation2], %s2954_s15 }
  0x89   : > { %3762 = dma.done.wait (%p4349_p6), %s419_s7, 128  }
  0x8a   : > { %3764 = vsyncadd (%p4349_p6), %s419_s7, 4294967168  ;;  %p4350_p4 = scmp.eq.s32.totalorder %s3900_s23, 0 }
  0x8c   : > { %3766 = dma.done.wait (%p4350_p4), [#allocation6], 32   ;;  %p4351_p1 = pmov %p4350_p4 }
  0x8e   : > { %3768 = vsyncadd (%p4351_p1), [#allocation6], 4294967264  ;;  %p4352_p3 = pmov %p4351_p1 }
  0x8f   : > { %p4353_p7 = pmov %p4351_p1 }
  0x90   : > { %3770 = dma.done.wait (%p4352_p3), [#allocation9], 4096  }
  0x91   : > { %3772 = vsyncadd (%p4353_p7), [#allocation9], 4294963200  ;;  %p4354_p11 = pmov %p4351_p1 }
  0x92   : > { %p4355_p10 = pmov %p4351_p1 }
  0x93   : > { %3774 = dma.done.wait (%p4354_p11), [#allocation12], 8192  }
  0x94   : > { %3776 = vsyncadd (%p4355_p10), [#allocation12], 4294959104  ;;  %v486_v0 = vld [vmem:[%s4051_s9] sm:$0xff]  ;;  %v3810_v3 = vmov 0.0   ;;  %v3394_v12 = vld [vmem:[#allocation8 + $0x7c] ss:$12 sps:$4 sm:$0xff]   ;;  %v550_v41 = vlaneseq }
  0x95   : > { %489 = vadd.xlane.f32.xlu0 %v486_v0  ;;  %v3386_v1 = vld [vmem:[#allocation8 + $0xac] ss:$12 sps:$4 sm:$0xff]   ;;  %v3388_v2 = vld [vmem:[#allocation8 + $0xa8] ss:$12 sps:$4 sm:$0xff]   ;;  %3173 = vmatprep.subr.bf16.mxu1 %v3810_v3  ;;  %v3389_v4 = vld [vmem:[#allocation8 + $0xb0] ss:$12 sps:$4 sm:$0xff]  }
  0x96   : > { %v3390_v5 = vld [vmem:[#allocation8 + $0x94] ss:$12 sps:$4 sm:$0xff]   ;;  %v3392_v6 = vld [vmem:[#allocation8 + $0x90] ss:$12 sps:$4 sm:$0xff]   ;;  %693 = vmatprep.subr.bf16.mxu0 %v3386_v1  ;;  %v3393_v7 = vld [vmem:[#allocation8 + $0x98] ss:$12 sps:$4 sm:$0xff]   ;;  %3174 = vmatpush3.bf16.msra.mxu1 %v3389_v4 }
  0x97   : > { %694 = vmatpush1.bf16.msra.mxu0 %v3388_v2  ;;  %3175 = vmatprep.subr.bf16.mxu1 %v3810_v3  ;;  %v3396_v13 = vld [vmem:[#allocation8 + $0x78] ss:$12 sps:$4 sm:$0xff]   ;;  %v3397_v14 = vld [vmem:[#allocation8 + $0x80] ss:$12 sps:$4 sm:$0xff]   ;;  %v3401_v17 = vld [vmem:[#allocation8 + $0x68] ss:$12 sps:$4 sm:$0xff]  }
  0x98   : > { %695 = vmatprep.subr.bf16.mxu0 %v3390_v5  ;;  %v3398_v15 = vld [vmem:[#allocation8 + $0x64] ss:$12 sps:$4 sm:$0xff]   ;;  %v3400_v16 = vld [vmem:[#allocation8 + $0x60] ss:$12 sps:$4 sm:$0xff]   ;;  %v3404_v19 = vld [vmem:[#allocation8 + $0x48] ss:$12 sps:$4 sm:$0xff]  }
  0x99   : > { %v3402_v18 = vld [vmem:[#allocation8 + $0x4c] ss:$12 sps:$4 sm:$0xff]   ;;  %v3405_v20 = vld [vmem:[#allocation8 + $0x50] ss:$12 sps:$4 sm:$0xff]   ;;  %v3406_v21 = vld [vmem:[#allocation8 + $0x34] ss:$12 sps:$4 sm:$0xff]  }
  0x9a   : > { %3176 = vmatpush3.bf16.msra.mxu1 %v3393_v7  ;;  %v3811_v22 = vmov 0   ;;  %vm3812_vm0 = vmmov 0   ;;  %v3408_v23 = vld [vmem:[#allocation8 + $0x30] ss:$12 sps:$4 sm:$0xff]   ;;  %v3409_v24 = vld [vmem:[#allocation8 + $0x38] ss:$12 sps:$4 sm:$0xff]  }
  0x9b   : > { %696 = vmatpush1.bf16.msra.mxu0 %v3392_v6  ;;  %3177 = vmatprep.subr.bf16.mxu1 %v3810_v3  ;;  %v3410_v25 = vld [vmem:[#allocation8 + $0x1c] ss:$12 sps:$4 sm:$0xff]   ;;  %v3412_v26 = vld [vmem:[#allocation8 + $0x18] ss:$12 sps:$4 sm:$0xff]   ;;  %v3413_v27 = vld [vmem:[#allocation8 + $0x20] ss:$12 sps:$4 sm:$0xff]  }
  0x9c   : > { %697 = vmatprep.subr.bf16.mxu0 %v3394_v12  ;;  %725 = vmatprep.mubr.bf16.mxu0 %v3811_v22  ;;  %v3414_v28 = vld [vmem:[#allocation8 + $0x4] ss:$12 sps:$4 sm:$0xff]   ;;  %v3416_v29 = vld [vmem:[#allocation8] ss:$12 sps:$4 sm:$0xff]   ;;  %v3417_v30 = vld [vmem:[#allocation8 + $0x8] ss:$12 sps:$4 sm:$0xff]  }
  0x9d   : > { %3189 = vmatprep.mubr.msk.bf16.mxu1 %vm3812_vm0, %v3810_v3  ;;  %v4083_v35 = vld [vmem:[#allocation5] ss:$0 sm:$0xff]  ;;  %v4085_v37 = vld [vmem:[#allocation7] ss:$0 sm:$0xff]  ;;  %v4093_v42 = vshrl.u32 %v550_v41, 7  ;;  %s3813_s3 = smov 32  }
  0x9e   : > { %3178 = vmatpush3.bf16.msra.mxu1 %v3397_v14  ;;  %v4099_v44 = vld [vmem:[%s4315_s4] sm:$0x7]  ;;  %s3814_s24 = smov 96   ;;  %s3815_s14 = smov 64   ;;  %v3816_v58 = vmov 1983009808  }
  0x9f   : > { %698 = vmatpush1.bf16.msra.mxu0 %v3396_v13  ;;  %3179 = vmatprep.subr.bf16.mxu1 %v3810_v3  ;;  %v556_v43 = vsub.s32 1, %v4093_v42  ;;  %v552_v50 = vsub.s32 0, %v4093_v42  ;;  %v807_v59 = vunpack.c.l.s4 %v3816_v58  ;;  %v3817_v60 = vmov 1934713408   ;;  %s3089_s16 = sshll.u32 %s3900_s23, 7  ;;  %s484_s7 = scalar_lea.vmem [#allocation14], %s2954_s15 }
  0xa0   : > { %699 = vmatprep.subr.bf16.mxu0 %v3398_v15  ;;  %v871_v61 = vunpack.c.l.s4 %v3817_v60  ;;  %vm1212_vm1 = vcmask 261120   ;;  %vm1517_vm2 = vcmask 64512   ;;  %p4356_p13 = scmp.ne.s32.totalorder %s4345_s21, 0  ;;  %s3818_s23 = smov [#allocation14]  }
  0xa1   : > { %v557_v45 = vrot.slane %v4099_v44, %v556_v43  ;;  %v553_v56 = vrot.slane %v4099_v44, %v552_v50  ;;  %v808_v62 = vunpack.c.0.s8 %v807_v59  ;;  %s3723_s13 = sshll.u32 %s3818_s23, 4  ;;  %s3724_s13 = int_to_ptr.vmem [resolvable:$false] %s3723_s13 }
  0xa2   : > { %3180 = vmatpush3.bf16.msra.mxu1 %v3401_v17  ;;  %v872_v1 = vunpack.c.0.s8 %v871_v61  ;;  %s3725_s15 = scalar_lea.vmem %s3724_s13, 256 }
  0xa3   : > { %700 = vmatpush1.bf16.msra.mxu0 %v3400_v16  ;;  %3181 = vmatprep.subr.bf16.mxu1 %v3810_v3  ;;  %v4117_v2 = vsub.s32 %v808_v62, %v4093_v42 }
  0xa4   : > { %701 = vmatprep.subr.bf16.mxu0 %v3402_v18 }
  0xa6   : > { %3182 = vmatpush3.bf16.msra.mxu1 %v3405_v20 }
  0xa7   : > { %702 = vmatpush1.bf16.msra.mxu0 %v3404_v19  ;;  %3183 = vmatprep.subr.bf16.mxu1 %v3810_v3 }
  0xa8   : > { %703 = vmatprep.subr.bf16.mxu0 %v3406_v21 }
  0xaa   : > { %3184 = vmatpush3.bf16.msra.mxu1 %v3409_v24 }
  0xab   : > { %704 = vmatpush1.bf16.msra.mxu0 %v3408_v23  ;;  %3185 = vmatprep.subr.bf16.mxu1 %v3810_v3 }
  0xac   : > { %705 = vmatprep.subr.bf16.mxu0 %v3410_v25 }
  0xae   : > { %3186 = vmatpush3.bf16.msra.mxu1 %v3413_v27 }
  0xaf   : > { %706 = vmatpush1.bf16.msra.mxu0 %v3412_v26  ;;  %3187 = vmatprep.subr.bf16.mxu1 %v3810_v3 }
  0xb0   : > { %707 = vmatprep.subr.bf16.mxu0 %v3414_v28 }
  0xb2   : > { %3188 = vmatpush3.bf16.msra.mxu1 %v3417_v30 }
  0xb3   : > { %708 = vmatpush1.bf16.msra.mxu0 %v3416_v29  ;;  %3198 = vmatprep.subr.mxu1 %v3810_v3 }
  0xb4   : > { %3193 = vmatprep.subr.mxu0 %v3810_v3 }
 0x11e   : > { %v490_v8 = vpop.xlane.xlu0 %489 }
 0x11f   : > { %v492_v9 = vmul.f32 0.0078125, %v490_v8 }
 0x121   : > { %v493_v10 = vsub.f32 %v486_v0, %v492_v9  ;;  %v4120_v9 = vsub.s32 %v872_v1, %v4093_v42 }
 0x123   : > { %v494_v11 = vmul.f32 %v493_v10, %v493_v10 }
 0x125   : > { %495 = vadd.xlane.f32.xlu0 %v494_v11 }
 0x1ae   : > { %v496_v31 = vpop.xlane.xlu0 %495 }
 0x1af   : > { %v497_v32 = vmul.f32 0.0078125, %v496_v31 }
 0x1b1   : > { %v498_v33 = vadd.f32 1e-05, %v497_v32 }
 0x1b3   : > { %3506 = vrsqrt.f32 %v498_v33 }
 0x1c0   : > { %v3507_v34 = vpop.eup %3506 }
 0x1c1   : > { %v500_v36 = vmul.f32 %v3507_v34, %v493_v10 }
 0x1c3   : > { %v507_v38 = vmul.f32 %v4083_v35, %v500_v36 }
 0x1c5   : > { %v514_v39 = vadd.f32 %v4085_v37, %v507_v38 }
 0x1c7   : > { %v515_v40 = vpack.c.bf16 %v514_v39, %v514_v39 }
 0x1c9   : > { %726 = vmatmul.mubr.bf16.vlgmr.msra.gmra.mxu0 %v515_v40  ;;  %3190 = vmatmul.mubr.bf16.vlgmr.msra.gmra.mxu1 %v515_v40 }
 0x1ca   : > { %3195 = vmatprep.mubr.msk.f32.mxu0 %vm3812_vm0, %v3810_v3  ;;  %3200 = vmatprep.mubr.msk.f32.mxu1 %vm3812_vm0, %v3810_v3 }
 0x289   : > { %v727_v46 = vpop.f32.mrf.mxu0  ;;  %v4104_v47 = vpop.f32.mrf.mxu1 }
 0x28a   : > { %v728_v57 = vadd.f32 %v727_v46, %v553_v56 }
 0x28b   : > { %v729_v48 = vpop.f32.mrf.mxu0  ;;  %v3191_v49 = vpop.f32.mrf.mxu1 }
 0x28c   : > { %v730_v51 = vadd.f32 %v729_v48, %v557_v45 }
 0x28d   : > { %v731_v52 = vpop.f32.mrf.mxu0  ;;  %v771_v53 = vpop.f32.mrf.mxu1 }
 0x28e   : > { %791 = vrot.lane.b32.xlu0 %v730_v51, %s3813_s3  ;;  %785 = vrot.lane.b32.xlu1 %v730_v51, %s3814_s24 }
 0x28f   : > { %v732_v54 = vpop.f32.mrf.mxu0  ;;  %v3192_v55 = vpop.f32.mrf.mxu1 }
 0x292   : > { %788 = vrot.lane.b32.xlu1 %v730_v51, %s3815_s14 }
 0x296   : > { %775 = vrot.lane.b32.xlu1 %v728_v57, %s3814_s24 }
 0x29a   : > { %778 = vrot.lane.b32.xlu1 %v728_v57, %s3815_s14 }
 0x29e   : > { %781 = vrot.lane.b32.xlu1 %v728_v57, %s3813_s3 }
 0x300   : > { %v792_v63 = vpop.permute.xlu0 %791  ;;  %v786_v0 = vpop.permute.xlu1 %785 }
 0x301   : > { %v852_v4 = vcombine.low %v786_v0, %v792_v63  ;;  %v853_v5 = vcombine.high %v786_v0, %v792_v63 }
 0x303   : > { %v860_v10 = vrot.slane %v852_v4, %v4117_v2  ;;  %v867_v11 = vrot.slane %v853_v5, %v4117_v2 }
 0x304   : > { %v789_v6 = vpop.permute.xlu1 %788 }
 0x305   : > { %v836_v7 = vcombine.low %v730_v51, %v789_v6  ;;  %v837_v8 = vcombine.high %v730_v51, %v789_v6 }
 0x307   : > { %v844_v12 = vrot.slane %v836_v7, %v4117_v2  ;;  %v851_v13 = vrot.slane %v837_v8, %v4117_v2 }
 0x308   : > { %v776_v14 = vpop.permute.xlu1 %775 }
 0x309   : > { %v900_v15 = vcombine.low %v844_v12, %v860_v10  ;;  %v901_v16 = vcombine.high %v844_v12, %v860_v10  ;;  %v916_v17 = vcombine.low %v851_v13, %v867_v11  ;;  %v917_v18 = vcombine.high %v851_v13, %v867_v11 }
 0x30b   : > { %v908_v19 = vrot.slane %v900_v15, %v4120_v9  ;;  %v915_v20 = vrot.slane %v901_v16, %v4120_v9  ;;  %v924_v21 = vrot.slane %v916_v17, %v4120_v9  ;;  %v931_v23 = vrot.slane %v917_v18, %v4120_v9 }
 0x30c   : > { %v779_v24 = vpop.permute.xlu1 %778 }
 0x30d   : > { %v2989_v25 = vcombine.low %v908_v19, %v915_v20  ;;  %v2991_v26 = vcombine.high %v908_v19, %v915_v20  ;;  %v2993_v27 = vcombine.low %v924_v21, %v931_v23  ;;  %v2995_v28 = vcombine.high %v924_v21, %v931_v23 }
 0x30e   : > { %v804_v33 = vcombine.low %v728_v57, %v779_v24  ;;  %v805_v34 = vcombine.high %v728_v57, %v779_v24 }
 0x30f   : > { %v1023_v29 = vrot.slane %v2989_v25, %v4117_v2  ;;  %v1039_v30 = vrot.slane %v2991_v26, %v4117_v2  ;;  %v1055_v31 = vrot.slane %v2993_v27, %v4117_v2  ;;  %v1071_v32 = vrot.slane %v2995_v28, %v4117_v2 }
 0x310   : > { %v782_v36 = vpop.permute.xlu1 %781  ;;  %v812_v48 = vrot.slane %v804_v33, %v4117_v2  ;;  %v819_v49 = vrot.slane %v805_v34, %v4117_v2 }
 0x311   : > { %v1088_v38 = vcombine.low %v1023_v29, %v1039_v30  ;;  %v1120_v39 = vcombine.low %v1055_v31, %v1071_v32  ;;  %v820_v40 = vcombine.low %v776_v14, %v782_v36  ;;  %v821_v41 = vcombine.high %v776_v14, %v782_v36 }
 0x312   : > { %v1089_v5 = vcombine.high %v1023_v29, %v1039_v30  ;;  %v1121_v6 = vcombine.high %v1055_v31, %v1071_v32 }
 0x313   : > { %v1096_v45 = vrot.slane %v1088_v38, %v4120_v9  ;;  %v1128_v46 = vrot.slane %v1120_v39, %v4120_v9  ;;  %v828_v51 = vrot.slane %v820_v40, %v4117_v2  ;;  %v835_v52 = vrot.slane %v821_v41, %v4117_v2 }
 0x314   : > { %v1103_v16 = vrot.slane %v1089_v5, %v4120_v9  ;;  %v1135_v17 = vrot.slane %v1121_v6, %v4120_v9 }
 0x315   : > { %v1140_v53 = vcombine.low %v1096_v45, %v1128_v46  ;;  %v1141_v54 = vcombine.high %v1096_v45, %v1128_v46  ;;  %v868_v55 = vcombine.low %v812_v48, %v828_v51  ;;  %v869_v56 = vcombine.high %v812_v48, %v828_v51 }
 0x316   : > { %v884_v57 = vcombine.low %v819_v49, %v835_v52  ;;  %v885_v58 = vcombine.high %v819_v49, %v835_v52  ;;  %v1142_v25 = vcombine.low %v1103_v16, %v1135_v17  ;;  %v1143_v26 = vcombine.high %v1103_v16, %v1135_v17 }
 0x317   : > { %3194 = vmatpush3.xpose.msk.msra.mxu0 %vm1212_vm1, %v1140_v53  ;;  %3199 = vmatpush3.xpose.msk.msra.mxu1 %vm1212_vm1, %v1141_v54  ;;  %v876_v59 = vrot.slane %v868_v55, %v4120_v9  ;;  %v883_v60 = vrot.slane %v869_v56, %v4120_v9  ;;  %v560_v46 = vsub.s32 2, %v4093_v42 }
 0x318   : > { %v892_v61 = vrot.slane %v884_v57, %v4120_v9  ;;  %v899_v62 = vrot.slane %v885_v58, %v4120_v9  ;;  %3203 = vmatprep.subr.mxu0 %v3810_v3  ;;  %3208 = vmatprep.subr.mxu1 %v3810_v3 }
 0x319   : > { %v2988_v63 = vcombine.low %v876_v59, %v883_v60  ;;  %v2990_v0 = vcombine.high %v876_v59, %v883_v60  ;;  %v561_v48 = vrot.slane %v4099_v44, %v560_v46 }
 0x31a   : > { %v2992_v1 = vcombine.low %v892_v61, %v899_v62  ;;  %v2994_v4 = vcombine.high %v892_v61, %v899_v62 }
 0x31b   : > { %v1016_v7 = vrot.slane %v2988_v63, %v4117_v2  ;;  %v1032_v8 = vrot.slane %v2990_v0, %v4117_v2  ;;  %v769_v49 = vadd.f32 %v4104_v47, %v561_v48 }
 0x31c   : > { %v1048_v10 = vrot.slane %v2992_v1, %v4117_v2  ;;  %v1064_v11 = vrot.slane %v2994_v4, %v4117_v2 }
 0x31d   : > { %v1072_v12 = vcombine.low %v1016_v7, %v1032_v8  ;;  %v1073_v13 = vcombine.high %v1016_v7, %v1032_v8 }
 0x31e   : > { %v1104_v14 = vcombine.low %v1048_v10, %v1064_v11  ;;  %v1105_v15 = vcombine.high %v1048_v10, %v1064_v11 }
 0x31f   : > { %v1080_v18 = vrot.slane %v1072_v12, %v4120_v9  ;;  %v1087_v23 = vrot.slane %v1073_v13, %v4120_v9 }
 0x320   : > { %v1112_v19 = vrot.slane %v1104_v14, %v4120_v9  ;;  %v1119_v24 = vrot.slane %v1105_v15, %v4120_v9 }
 0x322   : > { %v1136_v20 = vcombine.low %v1080_v18, %v1112_v19  ;;  %v1137_v21 = vcombine.high %v1080_v18, %v1112_v19  ;;  %v1138_v27 = vcombine.low %v1087_v23, %v1119_v24  ;;  %v1139_v28 = vcombine.high %v1087_v23, %v1119_v24 }
 0x324   : > { %3196 = vmatmul.mubr.msk.f32.vlgmr.msra.gmra.mxu0 %vm1212_vm1, %v1136_v20  ;;  %3201 = vmatmul.mubr.msk.f32.vlgmr.msra.gmra.mxu1 %vm1212_vm1, %v1137_v21 }
 0x325   : > { %3204 = vmatpush3.xpose.msk.msra.mxu0 %vm1212_vm1, %v1142_v25  ;;  %3209 = vmatpush3.xpose.msk.msra.mxu1 %vm1212_vm1, %v1143_v26 }
 0x326   : > { %3205 = vmatprep.mubr.msk.f32.mxu0 %vm3812_vm0, %v3810_v3  ;;  %3210 = vmatprep.mubr.msk.f32.mxu1 %vm3812_vm0, %v3810_v3 }
 0x327   : > { %3213 = vmatprep.subr.mxu0 %v3810_v3  ;;  %3218 = vmatprep.subr.mxu1 %v3810_v3 }
 0x328   : > { %3206 = vmatmul.mubr.msk.f32.vlgmr.msra.gmra.mxu0 %vm1212_vm1, %v1138_v27  ;;  %3211 = vmatmul.mubr.msk.f32.vlgmr.msra.gmra.mxu1 %vm1212_vm1, %v1139_v28 }
 0x329   : > { %3215 = vmatprep.mubr.msk.f32.mxu0 %vm3812_vm0, %v3810_v3  ;;  %3220 = vmatprep.mubr.msk.f32.mxu1 %vm3812_vm0, %v3810_v3 }
 0x3e4   : > { %v1285_v29 = vpop.f32.mrf.mxu0  ;;  %v1361_v30 = vpop.f32.mrf.mxu1 }
 0x3e5   : > { %v1521_v31 = vsel %vm1517_vm2, %v1361_v30, -inf  ;;  %v1518_v32 = vsel %vm1517_vm2, %v1285_v29, -inf }
 0x3e6   : > { %1522 = vmax.xlane.f32.xlu0 %v1521_v31  ;;  %v3202_v33 = vpop.f32.mrf.mxu1  ;;  %1519 = vmax.xlane.f32.xlu1 %v1518_v32  ;;  %v3197_v34 = vpop.f32.mrf.mxu0 }
 0x3e8   : > { %v1437_v36 = vpop.f32.mrf.mxu0  ;;  %v1513_v38 = vpop.f32.mrf.mxu1 }
 0x3e9   : > { %v1524_v39 = vsel %vm1517_vm2, %v1437_v36, -inf  ;;  %v1527_v45 = vsel %vm1517_vm2, %v1513_v38, -inf }
 0x3ea   : > { %v3212_v40 = vpop.f32.mrf.mxu1  ;;  %1525 = vmax.xlane.f32.xlu1 %v1524_v39  ;;  %v3207_v41 = vpop.f32.mrf.mxu0 }
 0x3ee   : > { %1528 = vmax.xlane.f32.xlu1 %v1527_v45 }
 0x3ff   : > { %795 = vrot.lane.b32.xlu1 %v769_v49, %s3814_s24  ;;  %s2802_s24 = scalar_lea.sflag [#allocation4], %s4045_s5 }
 0x46f   : > { %v1523_v51 = vpop.xlane.xlu0 %1522  ;;  %v1520_v52 = vpop.xlane.xlu1 %1519 }
 0x470   : > { %v1531_v53 = vsub.f32 %v1361_v30, %v1523_v51  ;;  %v1530_v54 = vsub.f32 %v1285_v29, %v1520_v52 }
 0x472   : > { %v1536_v55 = vmul.f32 1.442695, %v1531_v53  ;;  %v1534_v56 = vmul.f32 1.442695, %v1530_v54 }
 0x473   : > { %v1526_v57 = vpop.xlane.xlu1 %1525 }
 0x474   : > { %3508 = vpow2.f32 %v1536_v55  ;;  %v1532_v58 = vsub.f32 %v1437_v36, %v1526_v57 }
 0x475   : > { %3510 = vpow2.f32 %v1534_v56 }
 0x476   : > { %v1538_v59 = vmul.f32 1.442695, %v1532_v58 }
 0x477   : > { %v1529_v0 = vpop.xlane.xlu1 %1528 }
 0x478   : > { %3512 = vpow2.f32 %v1538_v59  ;;  %v1533_v1 = vsub.f32 %v1513_v38, %v1529_v0  ;;  %v3418_v0 = vld [vmem:[#allocation10 + $0x8] sm:$0xff]  }
 0x47a   : > { %v1540_v4 = vmul.f32 1.442695, %v1533_v1 }
 0x47b   : > { %v796_v7 = vpop.permute.xlu1 %795 }
 0x47c   : > { %3514 = vpow2.f32 %v1540_v4  ;;  %v3420_v4 = vld [vmem:[#allocation10] sm:$0xff]  }
 0x481   : > { %v4184_v60 = vpop.eup %3508 }
 0x482   : > { %v3511_v61 = vpop.eup %3510  ;;  %v1545_v44 = vsel %vm1517_vm2, %v4184_v60, 0.0 }
 0x483   : > { %v1542_v47 = vsel %vm1517_vm2, %v3511_v61, 0.0  ;;  %1546 = vadd.xlane.f32.xlu1 %v1545_v44 }
 0x484   : > { %1543 = vadd.xlane.f32.xlu0 %v1542_v47 }
 0x485   : > { %v4189_v62 = vpop.eup %3512 }
 0x486   : > { %v1548_v63 = vsel %vm1517_vm2, %v4189_v62, 0.0 }
 0x488   : > { %1549 = vadd.xlane.f32.xlu0 %v1548_v63 }
 0x489   : > { %v4195_v5 = vpop.eup %3514 }
 0x48a   : > { %v1551_v6 = vsel %vm1517_vm2, %v4195_v5, 0.0 }
 0x494   : > { %801 = vrot.lane.b32.xlu1 %v769_v49, %s3813_s3  ;;  %s2813_s3 = scalar_lea.hbm %s4322_s11, %s3089_s16 }
 0x49e   : > { %798 = vrot.lane.b32.xlu0 %v769_v49, %s3815_s14 }
 0x4b8   : > { %1552 = vadd.xlane.f32.xlu1 %v1551_v6  ;;  %v3421_v6 = vld [vmem:[#allocation10 + $0x10] sm:$0xff]  }
 0x50c   : > { %v1547_v8 = vpop.xlane.xlu1 %1546 }
 0x50d   : > { %v1544_v10 = vpop.xlane.xlu0 %1543  ;;  %3516 = vrcp.f32 %v1547_v8 }
 0x50e   : > { %3518 = vrcp.f32 %v1544_v10  ;;  %v3422_v10 = vld [vmem:[#allocation10 + $0x28] sm:$0xff]  }
 0x510   : > { %v802_v12 = vpop.permute.xlu1 %801 }
 0x511   : > { %v1550_v11 = vpop.xlane.xlu0 %1549  ;;  %v956_v13 = vcombine.low %v796_v7, %v802_v12  ;;  %v957_v14 = vcombine.high %v796_v7, %v802_v12  ;;  %v3424_v12 = vld [vmem:[#allocation10 + $0x38] sm:$0xff]  }
 0x512   : > { %3520 = vrcp.f32 %v1550_v11 }
 0x513   : > { %v964_v18 = vrot.slane %v956_v13, %v4117_v2  ;;  %v971_v19 = vrot.slane %v957_v14, %v4117_v2 }
 0x515   : > { %v799_v15 = vpop.permute.xlu0 %798 }
 0x516   : > { %v940_v16 = vcombine.low %v769_v49, %v799_v15  ;;  %v941_v17 = vcombine.high %v769_v49, %v799_v15 }
 0x518   : > { %v948_v20 = vrot.slane %v940_v16, %v4117_v2  ;;  %v955_v21 = vrot.slane %v941_v17, %v4117_v2  ;;  %v3423_v16 = vld [vmem:[#allocation10 + $0x20] sm:$0xff]   ;;  %v3425_v17 = vld [vmem:[#allocation10 + $0x30] sm:$0xff]  }
 0x51a   : > { %v972_v23 = vcombine.low %v948_v20, %v964_v18  ;;  %v973_v24 = vcombine.high %v948_v20, %v964_v18  ;;  %v988_v25 = vcombine.low %v955_v21, %v971_v19  ;;  %v989_v26 = vcombine.high %v955_v21, %v971_v19  ;;  %v3517_v51 = vpop.eup %3516 }
 0x51b   : > { %v3519_v52 = vpop.eup %3518  ;;  %v1559_v44 = vmul.f32 %v3517_v51, %v4184_v60 }
 0x51c   : > { %v980_v27 = vrot.slane %v972_v23, %v4120_v9  ;;  %v987_v28 = vrot.slane %v973_v24, %v4120_v9  ;;  %v996_v29 = vrot.slane %v988_v25, %v4120_v9  ;;  %v1003_v30 = vrot.slane %v989_v26, %v4120_v9 }
 0x51d   : > { %v1558_v59 = vmul.f32 %v3519_v52, %v3511_v61 }
 0x51e   : > { %v1144_v31 = vcombine.low %v980_v27, %v987_v28  ;;  %v2996_v32 = vcombine.high %v980_v27, %v987_v28  ;;  %v1160_v33 = vcombine.low %v996_v29, %v1003_v30  ;;  %v2997_v34 = vcombine.high %v996_v29, %v1003_v30 }
 0x520   : > { %v1151_v36 = vrot.slane %v1144_v31, %v4117_v2  ;;  %v1159_v38 = vrot.slane %v2996_v32, %v4117_v2  ;;  %v1167_v39 = vrot.slane %v1160_v33, %v4117_v2  ;;  %v1175_v40 = vrot.slane %v2997_v34, %v4117_v2  ;;  %v3521_v2 = vpop.eup %3520 }
 0x522   : > { %v1176_v41 = vcombine.low %v1151_v36, %v1159_v38  ;;  %v1192_v45 = vcombine.low %v1167_v39, %v1175_v40  ;;  %v1177_v48 = vcombine.high %v1151_v36, %v1159_v38  ;;  %v1193_v49 = vcombine.high %v1167_v39, %v1175_v40 }
 0x524   : > { %v1184_v53 = vrot.slane %v1176_v41, %v4120_v9  ;;  %v1200_v54 = vrot.slane %v1192_v45, %v4120_v9  ;;  %v1191_v55 = vrot.slane %v1177_v48, %v4120_v9  ;;  %v1207_v56 = vrot.slane %v1193_v49, %v4120_v9  ;;  %v3534_v49 = vld [vmem:[%s4051_s9] sm:$0xff]  ;;  %s2815_s9 = sshll.u32 %s484_s7, 4  ;;  %s2816_s9 = int_to_ptr.vmem [resolvable:$true] %s2815_s9 }
 0x525   : > { %v1560_v9 = vmul.f32 %v3521_v2, %v4189_v62  ;;  %v3419_v62 = vld [vmem:[#allocation10 + $0x18] sm:$0xff]   ;;  %s3719_s14 = scalar_lea.vmem %s2816_s9, 128  ;;  %p3726_p5 = scmp.lt.s32.totalorder %s2816_s9, %s3724_s13 }
 0x526   : > { %v1208_v57 = vcombine.low %v1184_v53, %v1200_v54  ;;  %v1209_v58 = vcombine.high %v1184_v53, %v1200_v54  ;;  %v1210_v47 = vcombine.low %v1191_v55, %v1207_v56  ;;  %v1211_v63 = vcombine.high %v1191_v55, %v1207_v56  ;;  %v3426_v53 = vld [vmem:[#allocation11 + $0xe0] ss:$16 sps:$4 sm:$0xff]   ;;  %v3428_v54 = vld [vmem:[#allocation11 + $0xe4] ss:$16 sps:$4 sm:$0xff]   ;;  %v3429_v55 = vld [vmem:[#allocation11 + $0xe8] ss:$16 sps:$4 sm:$0xff]   ;;  %p3720_p12 = scmp.ne.s32.totalorder %s2816_s9, %s3719_s14  ;;  %p3727_p8 = scmp.lt.s32.totalorder %s3725_s15, %s3719_s14 }
 0x527   : > { %v3431_v56 = vld [vmem:[#allocation11 + $0xec] ss:$16 sps:$4 sm:$0xff]  }
 0x528   : > { %3214 = vmatpush3.msra.mxu0 %v1208_v57  ;;  %3219 = vmatpush3.msra.mxu1 %v1209_v58  ;;  %v3434_v57 = vld [vmem:[#allocation11 + $0xc4] ss:$16 sps:$4 sm:$0xff]   ;;  %v3437_v58 = vld [vmem:[#allocation11 + $0xcc] ss:$16 sps:$4 sm:$0xff]   ;;  %p3721_p0 = pnand %p3720_p12, %p4356_p13  ;;  %p3728_p9 = por %p3727_p8, %p3726_p5 }
 0x529   : > { %3216 = vmatmul.mubr.msk.f32.vlgmr.msra.gmra.mxu0 %vm1517_vm2, %v1558_v59  ;;  %3221 = vmatmul.mubr.msk.f32.vlgmr.msra.gmra.mxu1 %vm1517_vm2, %v1559_v44  ;;  %v3432_v59 = vld [vmem:[#allocation11 + $0xc0] ss:$16 sps:$4 sm:$0xff]   ;;  %v3435_v44 = vld [vmem:[#allocation11 + $0xc8] ss:$16 sps:$4 sm:$0xff]  }
 0x52a   : > { %3223 = vmatprep.subr.mxu0 %v3810_v3  ;;  %3228 = vmatprep.subr.mxu1 %v3810_v3  ;;  %p3722_p2 = pneg %p3721_p0 }
 0x52b   : > { %3224 = vmatpush3.msra.mxu0 %v1210_v47  ;;  %3229 = vmatpush3.msra.mxu1 %v1211_v63 }
 0x52c   : > { %3225 = vmatprep.mubr.msk.f32.mxu0 %vm3812_vm0, %v3810_v3  ;;  %3230 = vmatprep.mubr.msk.f32.mxu1 %vm3812_vm0, %v3810_v3  ;;  %p3729_p6 = pnand %p3728_p9, %p3722_p2 }
 0x52d   : > { %3226 = vmatmul.mubr.msk.f32.vlgmr.msra.gmra.mxu0 %vm1517_vm2, %v1560_v9  ;;  %3233 = vmatprep.subr.bf16.mxu0 %v3810_v3  ;;  %v3440_v9 = vld [vmem:[#allocation11 + $0xa4] ss:$16 sps:$4 sm:$0xff]  }
 0x52e   : > { %3241 = vmatprep.subr.bf16.mxu1 %v3810_v3  ;;  %3234 = vmatpush3.bf16.msra.mxu0 %v3418_v0 }
 0x52f   : > { %3235 = vmatprep.subr.bf16.mxu0 %v3810_v3  ;;  %3237 = vmatprep.mubr.msk.bf16.mxu0 %vm3812_vm0, %v3810_v3 }
 0x532   : > { %3236 = vmatpush3.bf16.msra.mxu0 %v3420_v4  ;;  %v3444_v4 = vld [vmem:[#allocation11 + $0x80] ss:$16 sps:$4 sm:$0xff]  }
 0x533   : > { %3249 = vmatprep.subr.bf16.mxu0 %v3810_v3 }
 0x541   : > { %v1553_v60 = vpop.xlane.xlu1 %1552 }
 0x542   : > { %3522 = vrcp.f32 %v1553_v60  ;;  %v3443_v60 = vld [vmem:[#allocation11 + $0xac] ss:$16 sps:$4 sm:$0xff]  }
 0x54f   : > { %v3523_v61 = vpop.eup %3522 }
 0x550   : > { %v1561_v1 = vmul.f32 %v3523_v61, %v4195_v5  ;;  %v3438_v61 = vld [vmem:[#allocation11 + $0xa0] ss:$16 sps:$4 sm:$0xff]  }
 0x552   : > { %3231 = vmatmul.mubr.msk.f32.vlgmr.msra.gmra.mxu1 %vm1517_vm2, %v1561_v1  ;;  %v3446_v1 = vld [vmem:[#allocation11 + $0x84] ss:$16 sps:$4 sm:$0xff]  }
 0x553   : > { %3242 = vmatpush3.bf16.msra.mxu1 %v3419_v62  ;;  %3245 = vmatprep.mubr.msk.bf16.mxu1 %vm3812_vm0, %v3810_v3  ;;  %v3441_v62 = vld [vmem:[#allocation11 + $0xa8] ss:$16 sps:$4 sm:$0xff]  }
 0x554   : > { %3243 = vmatprep.subr.bf16.mxu1 %v3810_v3 }
 0x557   : > { %3244 = vmatpush3.bf16.msra.mxu1 %v3421_v6  ;;  %v3447_v6 = vld [vmem:[#allocation11 + $0x88] ss:$16 sps:$4 sm:$0xff]  }
 0x558   : > { %3257 = vmatprep.subr.bf16.mxu1 %v3810_v3 }
 0x5e9   : > { %v1631_v7 = vpop.f32.mrf.mxu0  ;;  %v1704_v8 = vpop.f32.mrf.mxu1 }
 0x5ea   : > { %v1854_v5 = vpack.c.bf16 %v1631_v7, %v1631_v7  ;;  %v1855_v11 = vpack.c.bf16 %v1704_v8, %v1704_v8  ;;  %v3449_v7 = vld [vmem:[#allocation11 + $0x8c] ss:$16 sps:$4 sm:$0xff]   ;;  %v3452_v8 = vld [vmem:[#allocation11 + $0x64] ss:$16 sps:$4 sm:$0xff]  }
 0x5eb   : > { %v3217_v13 = vpop.f32.mrf.mxu0  ;;  %v3222_v14 = vpop.f32.mrf.mxu1 }
 0x5ec   : > { %3238 = vmatmul.mubr.msk.bf16.vlgmr.msra.gmra.mxu0 %vm1212_vm1, %v1854_v5  ;;  %3246 = vmatmul.mubr.msk.bf16.vlgmr.msra.gmra.mxu1 %vm1212_vm1, %v1855_v11  ;;  %v3450_v5 = vld [vmem:[#allocation11 + $0x60] ss:$16 sps:$4 sm:$0xff]   ;;  %v3453_v11 = vld [vmem:[#allocation11 + $0x68] ss:$16 sps:$4 sm:$0xff]   ;;  %v3461_v13 = vld [vmem:[#allocation11 + $0x4c] ss:$16 sps:$4 sm:$0xff]  }
 0x5ed   : > { %v1777_v15 = vpop.f32.mrf.mxu0  ;;  %3250 = vmatpush3.bf16.msra.mxu0 %v3422_v10  ;;  %3253 = vmatprep.mubr.msk.bf16.mxu0 %vm3812_vm0, %v3810_v3  ;;  %v3455_v10 = vld [vmem:[#allocation11 + $0x6c] ss:$16 sps:$4 sm:$0xff]   ;;  %v3456_v14 = vld [vmem:[#allocation11 + $0x40] ss:$16 sps:$4 sm:$0xff]  }
 0x5ee   : > { %3251 = vmatprep.subr.bf16.mxu0 %v3810_v3  ;;  %3258 = vmatpush3.bf16.msra.mxu1 %v3424_v12  ;;  %v1856_v19 = vpack.c.bf16 %v1777_v15, %v1777_v15  ;;  %v3458_v12 = vld [vmem:[#allocation11 + $0x44] ss:$16 sps:$4 sm:$0xff]   ;;  %v3459_v15 = vld [vmem:[#allocation11 + $0x48] ss:$16 sps:$4 sm:$0xff]  }
 0x5ef   : > { %v3227_v18 = vpop.f32.mrf.mxu0  ;;  %3259 = vmatprep.subr.bf16.mxu1 %v3810_v3  ;;  %3261 = vmatprep.mubr.msk.bf16.mxu1 %vm3812_vm0, %v3810_v3 }
 0x5f0   : > { %v3462_v18 = vld [vmem:[#allocation11 + $0x20] ss:$16 sps:$4 sm:$0xff]  }
 0x5f1   : > { %3252 = vmatpush3.bf16.msra.mxu0 %v3423_v16  ;;  %v3464_v16 = vld [vmem:[#allocation11 + $0x24] ss:$16 sps:$4 sm:$0xff]  }
 0x5f2   : > { %3260 = vmatpush3.bf16.msra.mxu1 %v3425_v17  ;;  %2334 = vmatprep.subr.bf16.mxu0 %v3428_v54  ;;  %v3467_v17 = vld [vmem:[#allocation11 + $0x2c] ss:$16 sps:$4 sm:$0xff]  }
 0x5f3   : > { %2375 = vmatprep.subr.bf16.mxu1 %v3431_v56  ;;  %v3490_v54 = vld [vmem:[#allocation13 + $0x58] sm:$0xff]  }
 0x5f4   : > { %3254 = vmatmul.mubr.msk.bf16.vlgmr.msra.gmra.mxu0 %vm1212_vm1, %v1856_v19  ;;  %v3465_v19 = vld [vmem:[#allocation11 + $0x28] ss:$16 sps:$4 sm:$0xff]  }
 0x5f5   : > { %2366 = vmatprep.mubr.bf16.mxu0 %v3811_v22  ;;  %2335 = vmatpush1.bf16.msra.mxu0 %v3426_v53  ;;  %v3489_v53 = vld [vmem:[#allocation13 + $0xa0] sm:$0xff]   ;;  %v3492_v56 = vld [vmem:[#allocation13 + $0x18] sm:$0xff]  }
 0x5f6   : > { %2336 = vmatprep.subr.bf16.mxu0 %v3434_v57  ;;  %v3493_v57 = vld [vmem:[#allocation13 + $0x98] sm:$0xff]  }
 0x5f9   : > { %2337 = vmatpush1.bf16.msra.mxu0 %v3432_v59  ;;  %v3495_v59 = vld [vmem:[#allocation13 + $0xd0] sm:$0xff]  }
 0x5fa   : > { %2338 = vmatprep.subr.bf16.mxu0 %v3440_v9  ;;  %v3501_v9 = vld [vmem:[#allocation13 + $0x88] sm:$0xff]  }
 0x5fd   : > { %2339 = vmatpush1.bf16.msra.mxu0 %v3438_v61  ;;  %v3503_v61 = vld [vmem:[#allocation13 + $0xc0] sm:$0xff]  }
 0x5fe   : > { %2340 = vmatprep.subr.bf16.mxu0 %v3446_v1  ;;  %v3505_v1 = vld [vmem:[#allocation13 + $0x80] sm:$0xff]  }
 0x601   : > { %2341 = vmatpush1.bf16.msra.mxu0 %v3444_v4  ;;  %v2152_v4 = vld [vmem:[%s4319_s8] sm:$0xf] }
 0x602   : > { %2342 = vmatprep.subr.bf16.mxu0 %v3452_v8  ;;  %v2165_v8 = vrot.slane %v2152_v4, %v560_v46 }
 0x605   : > { %2343 = vmatpush1.bf16.msra.mxu0 %v3450_v5 }
 0x606   : > { %2344 = vmatprep.subr.bf16.mxu0 %v3458_v12 }
 0x609   : > { %2345 = vmatpush1.bf16.msra.mxu0 %v3456_v14 }
 0x60a   : > { %2346 = vmatprep.subr.bf16.mxu0 %v3464_v16 }
 0x60d   : > { %2347 = vmatpush1.bf16.msra.mxu0 %v3462_v18 }
 0x612   : > { %v1850_v20 = vpop.f32.mrf.mxu1 }
 0x613   : > { %v1857_v21 = vpack.c.bf16 %v1850_v20, %v1850_v20  ;;  %v3470_v20 = vld [vmem:[#allocation11 + $0x4] ss:$16 sps:$4 sm:$0xff]  }
 0x614   : > { %v3232_v23 = vpop.f32.mrf.mxu1  ;;  %2348 = vmatprep.subr.bf16.mxu0 %v3470_v20 }
 0x615   : > { %3262 = vmatmul.mubr.msk.bf16.vlgmr.msra.gmra.mxu1 %vm1212_vm1, %v1857_v21  ;;  %v3473_v21 = vld [vmem:[#allocation11 + $0xc] ss:$16 sps:$4 sm:$0xff]   ;;  %v3468_v23 = vld [vmem:[#allocation11] ss:$16 sps:$4 sm:$0xff]  }
 0x616   : > { %2407 = vmatprep.mubr.bf16.mxu1 %v3811_v22  ;;  %v3022_v22 = vld [vmem:[%s4317_s6] ss:$0 sm:$0xff]  ;;  %2376 = vmatpush1.bf16.msra.mxu1 %v3429_v55  ;;  %v3491_v55 = vld [vmem:[#allocation13 + $0xd8] sm:$0xff]  }
 0x617   : > { %2377 = vmatprep.subr.bf16.mxu1 %v3437_v58  ;;  %2349 = vmatpush1.bf16.msra.mxu0 %v3468_v23  ;;  %v3494_v58 = vld [vmem:[#allocation13 + $0x50] sm:$0xff]  }
 0x61a   : > { %2378 = vmatpush1.bf16.msra.mxu1 %v3435_v44  ;;  %v3496_v44 = vld [vmem:[#allocation13 + $0x10] sm:$0xff]  }
 0x61b   : > { %2379 = vmatprep.subr.bf16.mxu1 %v3443_v60  ;;  %v3502_v60 = vld [vmem:[#allocation13 + $0x40] sm:$0xff]  }
 0x61e   : > { %2380 = vmatpush1.bf16.msra.mxu1 %v3441_v62  ;;  %v3504_v62 = vld [vmem:[#allocation13] sm:$0xff]  }
 0x61f   : > { %2381 = vmatprep.subr.bf16.mxu1 %v3449_v7  ;;  %v2157_v7 = vrot.slane %v2152_v4, %v552_v50 }
 0x622   : > { %2382 = vmatpush1.bf16.msra.mxu1 %v3447_v6  ;;  %v2168_v6 = vsub.s32 3, %v4093_v42 }
 0x623   : > { %2383 = vmatprep.subr.bf16.mxu1 %v3455_v10  ;;  %v2161_v10 = vrot.slane %v2152_v4, %v556_v43 }
 0x624   : > { %v2169_v5 = vrot.slane %v2152_v4, %v2168_v6 }
 0x626   : > { %2384 = vmatpush1.bf16.msra.mxu1 %v3453_v11 }
 0x627   : > { %2385 = vmatprep.subr.bf16.mxu1 %v3461_v13 }
 0x62a   : > { %2386 = vmatpush1.bf16.msra.mxu1 %v3459_v15 }
 0x62b   : > { %2387 = vmatprep.subr.bf16.mxu1 %v3467_v17 }
 0x62e   : > { %2388 = vmatpush1.bf16.msra.mxu1 %v3465_v19 }
 0x62f   : > { %2389 = vmatprep.subr.bf16.mxu1 %v3473_v21 }
 0x6ac   : > { %v1923_v24 = vpop.f32.mrf.mxu0  ;;  %v1978_v25 = vpop.f32.mrf.mxu1 }
 0x6ad   : > { %v2094_v36 = vadd.f32 %v1978_v25, %v1923_v24  ;;  %v3471_v24 = vld [vmem:[#allocation11 + $0x8] ss:$16 sps:$4 sm:$0xff]  }
 0x6ae   : > { %v3239_v26 = vpop.f32.mrf.mxu0  ;;  %v3247_v27 = vpop.f32.mrf.mxu1  ;;  %2390 = vmatpush1.bf16.msra.mxu1 %v3471_v24 }
 0x6b0   : > { %v1926_v28 = vpop.f32.mrf.mxu0  ;;  %v1981_v3 = vpop.f32.mrf.mxu1 }
 0x6b2   : > { %v3240_v29 = vpop.f32.mrf.mxu0  ;;  %v3248_v30 = vpop.f32.mrf.mxu1 }
 0x6b4   : > { %v2033_v31 = vpop.f32.mrf.mxu0 }
 0x6b5   : > { %v2095_v38 = vadd.f32 %v2094_v36, %v2033_v31  ;;  %v3477_v36 = vld [vmem:[#allocation13 + $0xb8] sm:$0xff]  }
 0x6b6   : > { %v3255_v32 = vpop.f32.mrf.mxu0 }
 0x6b7   : > { %v3474_v32 = vld [vmem:[#allocation13 + $0x78] sm:$0xff]  }
 0x6b8   : > { %v2036_v33 = vpop.f32.mrf.mxu0  ;;  %3129 = vmatprep.subr.bf16.mxu0 %v3474_v32 }
 0x6b9   : > { %v3475_v33 = vld [vmem:[#allocation13 + $0xf8] sm:$0xff]  }
 0x6ba   : > { %v3256_v34 = vpop.f32.mrf.mxu0  ;;  %3151 = vmatprep.subr.bf16.mxu1 %v3475_v33 }
 0x6bb   : > { %v3476_v34 = vld [vmem:[#allocation13 + $0x38] sm:$0xff]  }
 0x6d5   : > { %v2088_v39 = vpop.f32.mrf.mxu1 }
 0x6d6   : > { %v2096_v40 = vadd.f32 %v2095_v38, %v2088_v39  ;;  %v3478_v38 = vld [vmem:[#allocation13 + $0x70] sm:$0xff]  }
 0x6d7   : > { %v3263_v41 = vpop.f32.mrf.mxu1  ;;  %v3479_v39 = vld [vmem:[#allocation13 + $0xf0] sm:$0xff]  }
 0x6d8   : > { %v2104_v45 = vadd.f32 %v3022_v22, %v2096_v40  ;;  %v3480_v22 = vld [vmem:[#allocation13 + $0x30] sm:$0xff]   ;;  %v3484_v41 = vld [vmem:[#allocation13 + $0x28] sm:$0xff]  }
 0x6d9   : > { %v2091_v48 = vpop.f32.mrf.mxu1  ;;  %v3481_v40 = vld [vmem:[#allocation13 + $0xb0] sm:$0xff]  }
 0x6da   : > { %v4254_v51 = vadd.f32 %v3534_v49, %v2104_v45  ;;  %v3485_v45 = vld [vmem:[#allocation13 + $0xa8] sm:$0xff]   ;;  %v3486_v48 = vld [vmem:[#allocation13 + $0x60] sm:$0xff]  }
 0x6db   : > { %v3264_v52 = vpop.f32.mrf.mxu1  ;;  %v3487_v49 = vld [vmem:[#allocation13 + $0xe0] sm:$0xff]  }
 0x6dc   : > { %2106 = vadd.xlane.f32.xlu0 %v4254_v51  ;;  %v3488_v52 = vld [vmem:[#allocation13 + $0x20] sm:$0xff]  }
 0x765   : > { %v2107_v2 = vpop.xlane.xlu0 %2106 }
 0x766   : > { %v2108_v47 = vmul.f32 0.0078125, %v2107_v2  ;;  %v3497_v2 = vld [vmem:[#allocation13 + $0x90] sm:$0xff]  }
 0x768   : > { %v2109_v63 = vsub.f32 %v4254_v51, %v2108_v47  ;;  %v3498_v47 = vld [vmem:[#allocation13 + $0x48] sm:$0xff]  }
 0x76a   : > { %v2110_v0 = vmul.f32 %v2109_v63, %v2109_v63 }
 0x76c   : > { %2111 = vadd.xlane.f32.xlu0 %v2110_v0  ;;  %v3500_v0 = vld [vmem:[#allocation13 + $0x8] sm:$0xff]  }
 0x7f5   : > { %v2112_v25 = vpop.xlane.xlu0 %2111 }
 0x7f6   : > { %v2113_v26 = vmul.f32 0.0078125, %v2112_v25 }
 0x7f8   : > { %v2114_v27 = vadd.f32 1e-05, %v2113_v26 }
 0x7fa   : > { %3524 = vrsqrt.f32 %v2114_v27 }
 0x807   : > { %v3525_v28 = vpop.eup %3524 }
 0x808   : > { %v2116_v3 = vmul.f32 %v3525_v28, %v2109_v63  ;;  %v3499_v63 = vld [vmem:[#allocation13 + $0xc8] sm:$0xff]  }
 0x80a   : > { %v2117_v29 = vmul.f32 %v4083_v35, %v2116_v3  ;;  %v3482_v35 = vld [vmem:[#allocation13 + $0x68] sm:$0xff]  }
 0x80c   : > { %v2118_v30 = vadd.f32 %v4085_v37, %v2117_v29  ;;  %v3483_v37 = vld [vmem:[#allocation13 + $0xe8] sm:$0xff]  }
 0x80e   : > { %v2119_v31 = vpack.c.bf16 %v2118_v30, %v2118_v30 }
 0x810   : > { %2367 = vmatmul.mubr.bf16.vlgmr.msra.gmra.mxu0 %v2119_v31  ;;  %2408 = vmatmul.mubr.bf16.vlgmr.msra.gmra.mxu1 %v2119_v31 }
 0x811   : > { %3130 = vmatpush3.bf16.msra.mxu0 %v3476_v34  ;;  %3152 = vmatpush3.bf16.msra.mxu1 %v3477_v36 }
 0x812   : > { %3131 = vmatprep.subr.bf16.mxu0 %v3478_v38  ;;  %3153 = vmatprep.subr.bf16.mxu1 %v3479_v39 }
 0x815   : > { %3132 = vmatpush3.bf16.msra.mxu0 %v3480_v22  ;;  %3154 = vmatpush3.bf16.msra.mxu1 %v3481_v40 }
 0x816   : > { %3133 = vmatprep.subr.bf16.mxu0 %v3482_v35  ;;  %3155 = vmatprep.subr.bf16.mxu1 %v3483_v37 }
 0x819   : > { %3134 = vmatpush3.bf16.msra.mxu0 %v3484_v41  ;;  %3156 = vmatpush3.bf16.msra.mxu1 %v3485_v45 }
 0x81a   : > { %3135 = vmatprep.subr.bf16.mxu0 %v3486_v48  ;;  %3157 = vmatprep.subr.bf16.mxu1 %v3487_v49 }
 0x81d   : > { %3136 = vmatpush3.bf16.msra.mxu0 %v3488_v52  ;;  %3158 = vmatpush3.bf16.msra.mxu1 %v3489_v53 }
 0x81e   : > { %3137 = vmatprep.subr.bf16.mxu0 %v3490_v54  ;;  %3159 = vmatprep.subr.bf16.mxu1 %v3491_v55 }
 0x821   : > { %3138 = vmatpush3.bf16.msra.mxu0 %v3492_v56  ;;  %3160 = vmatpush3.bf16.msra.mxu1 %v3493_v57 }
 0x822   : > { %3139 = vmatprep.subr.bf16.mxu0 %v3494_v58  ;;  %3161 = vmatprep.subr.bf16.mxu1 %v3495_v59 }
 0x825   : > { %3140 = vmatpush3.bf16.msra.mxu0 %v3496_v44  ;;  %3162 = vmatpush3.bf16.msra.mxu1 %v3497_v2 }
 0x826   : > { %3141 = vmatprep.subr.bf16.mxu0 %v3498_v47  ;;  %3163 = vmatprep.subr.bf16.mxu1 %v3499_v63 }
 0x829   : > { %3142 = vmatpush3.bf16.msra.mxu0 %v3500_v0  ;;  %3164 = vmatpush3.bf16.msra.mxu1 %v3501_v9 }
 0x82a   : > { %3143 = vmatprep.subr.bf16.mxu0 %v3502_v60  ;;  %3165 = vmatprep.subr.bf16.mxu1 %v3503_v61  ;;  %v3055_v61 = vld [vmem:[%s4321_s10] ss:$0 sm:$0xff] }
 0x82d   : > { %3144 = vmatpush3.bf16.msra.mxu0 %v3504_v62  ;;  %3166 = vmatpush3.bf16.msra.mxu1 %v3505_v1 }
 0x8d0   : > { %v2368_v11 = vpop.f32.mrf.mxu0  ;;  %v2409_v12 = vpop.f32.mrf.mxu1 }
 0x8d1   : > { %v2369_v13 = vadd.f32 %v2368_v11, %v2157_v7  ;;  %v2410_v14 = vadd.f32 %v2409_v12, %v2165_v8 }
 0x8d2   : > { %v2370_v15 = vpop.f32.mrf.mxu0  ;;  %v2411_v16 = vpop.f32.mrf.mxu1 }
 0x8d3   : > { %v2416_v17 = vmul.f32 %v2369_v13, %v2369_v13  ;;  %v2418_v18 = vmul.f32 %v2410_v14, %v2410_v14  ;;  %v2371_v19 = vadd.f32 %v2370_v15, %v2161_v10  ;;  %v2412_v20 = vadd.f32 %v2411_v16, %v2169_v5 }
 0x8d4   : > { %v2372_v21 = vpop.f32.mrf.mxu0  ;;  %v2413_v23 = vpop.f32.mrf.mxu1 }
 0x8d5   : > { %v2420_v50 = vmul.f32 %v2416_v17, %v2369_v13  ;;  %v2422_v24 = vmul.f32 %v2418_v18, %v2410_v14  ;;  %v2417_v25 = vmul.f32 %v2371_v19, %v2371_v19  ;;  %v2419_v46 = vmul.f32 %v2412_v20, %v2412_v20 }
 0x8d6   : > { %v2373_v26 = vpop.f32.mrf.mxu0  ;;  %v2414_v42 = vpop.f32.mrf.mxu1 }
 0x8d7   : > { %v2424_v43 = vmul.f32 0.044715, %v2420_v50  ;;  %v2426_v27 = vmul.f32 0.044715, %v2422_v24  ;;  %v2421_v28 = vmul.f32 %v2417_v25, %v2371_v19  ;;  %v2423_v3 = vmul.f32 %v2419_v46, %v2412_v20 }
 0x8d9   : > { %v2428_v29 = vadd.f32 %v2424_v43, %v2369_v13  ;;  %v2430_v30 = vadd.f32 %v2426_v27, %v2410_v14  ;;  %v2425_v31 = vmul.f32 0.044715, %v2421_v28  ;;  %v2427_v32 = vmul.f32 0.044715, %v2423_v3 }
 0x8db   : > { %v2432_v33 = vmul.f32 0.7978846, %v2428_v29  ;;  %v2434_v34 = vmul.f32 0.7978846, %v2430_v30  ;;  %v2429_v36 = vadd.f32 %v2425_v31, %v2371_v19  ;;  %v2431_v38 = vadd.f32 %v2427_v32, %v2412_v20 }
 0x8dd   : > { %3526 = vtanh.f32 %v2432_v33  ;;  %v2433_v39 = vmul.f32 0.7978846, %v2429_v36  ;;  %v2435_v22 = vmul.f32 0.7978846, %v2431_v38 }
 0x8de   : > { %3528 = vtanh.f32 %v2434_v34 }
 0x8df   : > { %3530 = vtanh.f32 %v2433_v39 }
 0x8e0   : > { %3532 = vtanh.f32 %v2435_v22 }
 0x8ea   : > { %v3527_v40 = vpop.eup %3526 }
 0x8eb   : > { %v3529_v35 = vpop.eup %3528  ;;  %v2440_v37 = vadd.f32 1.0, %v3527_v40 }
 0x8ec   : > { %v3531_v41 = vpop.eup %3530  ;;  %v2442_v45 = vadd.f32 1.0, %v3529_v35 }
 0x8ed   : > { %v3533_v48 = vpop.eup %3532  ;;  %v2441_v49 = vadd.f32 1.0, %v3531_v41  ;;  %v2444_v52 = vmul.f32 0.5, %v2440_v37 }
 0x8ee   : > { %v2443_v53 = vadd.f32 1.0, %v3533_v48  ;;  %v2446_v54 = vmul.f32 0.5, %v2442_v45 }
 0x8ef   : > { %v2445_v55 = vmul.f32 0.5, %v2441_v49  ;;  %v2448_v57 = vmul.f32 %v2444_v52, %v2369_v13 }
 0x8f0   : > { %v2447_v56 = vmul.f32 0.5, %v2443_v53  ;;  %v2450_v59 = vmul.f32 %v2446_v54, %v2410_v14 }
 0x8f1   : > { %v2449_v58 = vmul.f32 %v2445_v55, %v2371_v19  ;;  %v2452_v63 = vpack.c.bf16 %v2448_v57, %v2448_v57 }
 0x8f2   : > { %v2451_v44 = vmul.f32 %v2447_v56, %v2412_v20  ;;  %v2454_v0 = vpack.c.bf16 %v2450_v59, %v2450_v59 }
 0x8f3   : > { %v2453_v2 = vpack.c.bf16 %v2449_v58, %v2449_v58 }
 0x8f4   : > { %v2455_v47 = vpack.c.bf16 %v2451_v44, %v2451_v44 }
 0x8f5   : > { %2751 = vmatprep.mubr.bf16.mxu0 %v2453_v2 }
 0x8f6   : > { %2791 = vmatprep.mubr.bf16.mxu1 %v2455_v47  ;;  %2752 = vmatmul.mubr.bf16.vlgmr.msra.gmra.mxu0 %v2452_v63 }
 0x8f7   : > { %2792 = vmatmul.mubr.bf16.vlgmr.msra.gmra.mxu1 %v2454_v0 }
 0x9b6   : > { %v3145_v9 = vpop.f32.mrf.mxu0 }
 0x9b7   : > { %v3167_v60 = vpop.f32.mrf.mxu1 }
 0x9b8   : > { %v3146_v62 = vpop.f32.mrf.mxu0 }
 0x9b9   : > { %v3147_v1 = vadd.f32 %v3146_v62, %v3145_v9  ;;  %v3168_v4 = vpop.f32.mrf.mxu1 }
 0x9ba   : > { %v3148_v6 = vpop.f32.mrf.mxu0  ;;  %v3169_v8 = vadd.f32 %v3168_v4, %v3167_v60 }
 0x9bb   : > { %v2754_v7 = vadd.f32 %v3147_v1, %v3055_v61  ;;  %v3170_v10 = vpop.f32.mrf.mxu1 }
 0x9bc   : > { %v3149_v5 = vpop.f32.mrf.mxu0 }
 0x9bd   : > { %v2794_v11 = vadd.f32 %v3169_v8, %v2754_v7  ;;  %v3171_v12 = vpop.f32.mrf.mxu1 }
 0x9bf   : > { %v2799_v13 = vadd.f32 %v2794_v11, %v4254_v51 }
 0x9c1   : > { %2800 = vst [vmem:[%s484_s7] sm:$0xff] %v2799_v13 }
 0x9c2   : > { %3732 = shalt.err (!%p3729_p6)
}
 0x9c3   : > { %s3733_s29 = scalar_lea.hbm %s2813_s3, 128  ;;  %s3737_s12 = scalar_lea.hbm %s4322_s11, 256 }
 0x9c4   : > { %p3734_p4 = scmp.ne.s32.totalorder %s2813_s3, %s3733_s29  ;;  %p3738_p7 = scmp.lt.s32.totalorder %s2813_s3, %s4322_s11 }
 0x9c5   : > { %p3739_p11 = scmp.lt.s32.totalorder %s3737_s12, %s3733_s29 }
 0x9c6   : > { %p3735_p1 = pnand %p3734_p4, %p4356_p13 }
 0x9c7   : > { %p3740_p10 = por %p3739_p11, %p3738_p7 }
 0x9c8   : > { %p3736_p3 = pneg %p3735_p1 }
 0x9ca   : > { %p3741_p12 = pnand %p3740_p10, %p3736_p3 }
 0x9cc   : > { %3744 = shalt.err (!%p3741_p12)
}
 0x9cd   : > { %3291 = dma.vmem_to_hbm [thread:$0]  (%p4356_p13), %s2816_s9, 128, %s2813_s3, %s2802_s24  }
 0x9ce PF: > { %s2827_s16 = sand.u32 1, %s3783_s17   ;;  %p4357_p0 = scmp.ne.s32.totalorder %s4346_s28, 0 }
 0x9cf   : > { %p4358_p2 = scmp.ge.s32.totalorder %s3795_s20, 2  ;;  %s2828_s7 = scalar_lea.sflag [#allocation4], %s2827_s16 }
 0x9d1   : > { %p3317_p5 = pnand %p4358_p2, %p4357_p0 }
 0x9d3   : > { %p3318_p8 = pneg %p3317_p5 }
 0x9d5   : > { %3778 = dma.done.wait (%p3318_p8), %s2828_s7, 128  }
 0x9d6   : > { %3780 = vsyncadd (%p3318_p8), %s2828_s7, 4294967168  ;;  %p27_p9 = scmp.ge.s32.totalorder %s3982_s27, 4   ;;  %s4359_s17 = smov %s3787_s18 }
 0x9d7   : > { %s4360_s18 = smov %s3791_s19  ;;  %s4361_s19 = smov %s3993_s26 }
 0x9d8   : > { %s4362_s20 = smov %s3982_s27  ;;  %29 = sbr.rel (!%p27_p9) target bundleno = 15 (0xf), region = 133 }
 0x9dd   :  { %2833 = vsyncpa [#allocation3], 1 }
 0x9de   :  { %2835 = vsyncpa [#allocation3 + $0x1], 1 }
 0x9df   :  { %2836 = vsyncpa [#allocation6], 1 }
 0x9e0   :  { %2837 = vsyncpa [#allocation9], 1 }
 0x9e1   :  { %2838 = vsyncpa [#allocation12], 1 }
 0x9e2   :  { %2839 = vsyncpa [#allocation4], 1 }
 0x9e3   :  { %2841 = vsyncpa [#allocation4 + $0x1], 1 }

</bundles_post_ra>
